<compile_context>
chip_gen: v6e
topology: v6e:2x2x1
jax: 0.10.0
libtpu: 0.0.40
codegen_flags: <defaults>
</compile_context>

<pallas_src>
import math

import numpy as np
import jax
import jax.numpy as jnp
from jax.experimental import pallas as pl
from jax.experimental.pallas import tpu as pltpu

# ----------------- hyperparameters -----------------
B = 2                       # batch
S = 8                       # senquenz_length
INPUT_DIM = 16              # input_dim
EMB_DIM = 8                 # emb_dim_local
NUM_VEC = 32                # num_vec_local
LAT = 8                     # latent_dim_local
NUM_LAYERS_ENC_LOCAL = 2
NUM_LAYERS_DEC_LOCAL = 2
NUM_LAYERS_DEC_GLOBAL = 2
LAT_G = LAT * S             # latent_dim_global (only_global_decode=True assert)
OUT_G = INPUT_DIM * S       # flattened output dim = 128
LW = 128                    # lane width of the packed weight slab / activations

# ----- layer dimensions, mirroring the PyTorch constructors -----
_red = INPUT_DIM + EMB_DIM - LAT
DIMS_ENC = [INPUT_DIM + EMB_DIM]
for i in range(NUM_LAYERS_ENC_LOCAL - 1):
    DIMS_ENC.append(round(INPUT_DIM + EMB_DIM - _red * (i + 1) / NUM_LAYERS_ENC_LOCAL))
DIMS_ENC.append(LAT)                                    # [24, 16, 8]

_inc = LAT - INPUT_DIM
DIMS_DEC = [LAT]
for i in range(NUM_LAYERS_DEC_LOCAL - 1):
    DIMS_DEC.append(round(LAT - _inc * (i + 1) / NUM_LAYERS_DEC_LOCAL))
DIMS_DEC.append(INPUT_DIM)                              # [8, 12, 16]
# TODO(synk): the PyTorch constructor declares the local decoder in_features = latent_dim,
# but the forward feeds latent[:, :, :-1] (latent_dim-1 features); weights are sized to the
# actual forward dataflow so the forward as written is runnable.
DIMS_DEC[0] = LAT - 1                                   # [7, 12, 16]

_incg = (OUT_G - LAT_G) / NUM_LAYERS_DEC_GLOBAL
DIMS_GDEC = [LAT_G]
for i in range(NUM_LAYERS_DEC_GLOBAL - 1):
    DIMS_GDEC.append(round(LAT_G + _incg * (i + 1)))
DIMS_GDEC.append(OUT_G)                                 # [64, 96, 128]
# TODO(synk): same constructor/forward mismatch for the global decoder: the forward slices
# the latent twice and flattens (LAT-2)*S = 48 features; weights sized to the dataflow.
DIMS_GDEC[0] = (LAT - 2) * S                            # [48, 96, 128]

H1 = DIMS_ENC[1]      # 16
H2 = DIMS_DEC[1]      # 12
HG = DIMS_GDEC[1]     # 96
GF = DIMS_GDEC[0]     # 48

# ----- packed weight-slab layout (rows, all 128 lanes, zero padded, 8-row aligned) -----
R_WF, R_WE, R_W1, R_WD0, R_WD1, R_WG0, R_WG1 = 0, 128, 384, 512, 640, 768, 896
R_B0, R_B1, R_BD0, R_BD1, R_BG0, R_BG1 = 1024, 1032, 1040, 1048, 1056, 1064
SLAB_ROWS = 1072


def _gelu(x):
    # nn.GELU() default = exact erf form.  erf via Abramowitz-Stegun 7.1.26
    # (|err| < 1.5e-7).  The divide is replaced by an EUP approximate reciprocal
    # plus one Newton step, keeping the VALU free.
    p = 0.3275911
    a1, a2, a3, a4, a5 = 0.254829592, -0.284496736, 1.421413741, -1.453152027, 1.061405429
    z = x * 0.7071067811865476
    az = jnp.abs(z)
    d = 1.0 + p * az
    t = pl.reciprocal(d, approx=True)
    t = t * (2.0 - d * t)                 # Newton refinement -> ~f32 accurate
    poly = t * (a1 + t * (a2 + t * (a3 + t * (a4 + t * a5))))
    erf_abs = 1.0 - poly * jnp.exp(-az * az)
    erf = jnp.where(z < 0, -erf_abs, erf_abs)
    return 0.5 * x * (1.0 + erf)


# ----------------- fused kernel -----------------
def _fused_kernel(feats_ref, idxf_ref, w_ref, dec_ref, rec_ref):
    f32 = jnp.float32
    feats = feats_ref[...]                                   # (B, S*INPUT_DIM) = (2, 128)

    # ---- nn.Embedding folded into the first encoder Linear ----------------------
    # one-hot laid out per sequence position along lanes:
    #   onehot[b, s*NUM_VEC + v] = 1.0  iff  v == int(x[b, s, -1])
    idx_i = idxf_ref[...].astype(jnp.int32)                  # trunc toward 0 == .int()
    pos = jax.lax.broadcasted_iota(jnp.int32, (B, S), 1)
    valid = (idx_i >= 0) & (idx_i < NUM_VEC)
    tgt_small = jnp.where(valid, idx_i + pos * NUM_VEC, -1).astype(f32)   # (B, S)
    # block-selector rep[s, l] = 1.0 iff lane l is inside position s's 32-lane group
    sub = jax.lax.broadcasted_iota(jnp.int32, (S, S * NUM_VEC), 0)
    ln = jax.lax.broadcasted_iota(jnp.int32, (S, S * NUM_VEC), 1)
    lo = sub * NUM_VEC
    rep = ((ln >= lo) & (ln < lo + NUM_VEC)).astype(f32)     # (S, 256)
    # broadcast the per-position target lane across its 32-lane group (exact in bf16
    # since every value is an integer < 256); gives a lane-major layout for free.
    tgt = jnp.dot(tgt_small, rep, preferred_element_type=f32)             # (B, 256)
    lanes = jax.lax.broadcasted_iota(jnp.int32, (B, S * NUM_VEC), 1).astype(f32)
    onehot = jnp.where(lanes == tgt, 1.0, 0.0)               # (B, 256)

    # ---- packed weight slab: static, 8-row-aligned views -------------------------
    wf = w_ref[R_WF:R_WF + LW, :]                # blockdiag(W0_feats)          (128,128)
    we = w_ref[R_WE:R_WE + S * NUM_VEC, :]       # blockdiag(emb @ W0_emb)      (256,128)
    w1 = w_ref[R_W1:R_W1 + LW, :]                # blockdiag(W_enc1)            (128,128)
    wd0 = w_ref[R_WD0:R_WD0 + LW, :]             # blockdiag(W_dec0), row s*8+7 zeroed
    wd1 = w_ref[R_WD1:R_WD1 + LW, :]             # blockdiag(W_dec1)
    wg0 = w_ref[R_WG0:R_WG0 + LW, :]             # global W0 expanded, rows s*8+{6,7} zeroed
    wg1 = w_ref[R_WG1:R_WG1 + LW, :]             # global W1
    b0 = w_ref[R_B0:R_B0 + 1, :]
    b1 = w_ref[R_B1:R_B1 + 1, :]
    bd0 = w_ref[R_BD0:R_BD0 + 1, :]
    bd1 = w_ref[R_BD1:R_BD1 + 1, :]
    bg0 = w_ref[R_BG0:R_BG0 + 1, :]
    bg1 = w_ref[R_BG1:R_BG1 + 1, :]

    # ---- local encoder: Linear(24,16) -> GELU -> Linear(16,8), per position ------
    h1 = _gelu(jnp.dot(feats, wf, preferred_element_type=f32)
               + jnp.dot(onehot, we, preferred_element_type=f32) + b0)   # (B,128)
    lat = jnp.dot(h1, w1, preferred_element_type=f32) + b1               # (B,128); lanes>=64 zero

    # ---- the two decode branches are independent given `lat`; issue their first
    #      matmuls back-to-back so the MXU result-FIFO drains overlap ---------------
    gg = _gelu(_gelu(lat))           # gelu -> flattened_encoder (Identity) -> gelu
    dh_pre = jnp.dot(lat, wd0, preferred_element_type=f32) + bd0   # local dec layer 0
    gh_pre = jnp.dot(gg, wg0, preferred_element_type=f32) + bg0    # global dec layer 0
    dh = _gelu(dh_pre)
    gh = _gelu(gh_pre)
    # reconstruction: (B, S*INPUT_DIM) = (2,128) lane-dense slab
    rec_ref[...] = jnp.dot(dh, wd1, preferred_element_type=f32) + bd1
    # global decode: (B, OUT_G) = (2,128) lane-dense slab
    dec_ref[...] = jnp.dot(gh, wg1, preferred_element_type=f32) + bg1


# ----------------- pallas_call wrapper -----------------
def _fused_call(feats, idxf, wslab):
    full = lambda i: (0, 0)
    return pl.pallas_call(
        _fused_kernel,
        grid=(1,),
        in_specs=[
            pl.BlockSpec((B, S * INPUT_DIM), full),   # feats, lane-dense (2,128)
            pl.BlockSpec((B, S), full),               # embedding indices (as float)
            pl.BlockSpec((SLAB_ROWS, LW), full),      # packed weight/bias slab
        ],
        out_specs=[
            pl.BlockSpec((B, OUT_G), full),
            pl.BlockSpec((B, S * INPUT_DIM), full),
        ],
        out_shape=[
            jax.ShapeDtypeStruct((B, OUT_G), jnp.float32),
            jax.ShapeDtypeStruct((B, S * INPUT_DIM), jnp.float32),
        ],
        compiler_params=pltpu.CompilerParams(
            dimension_semantics=("arbitrary",)),  # single step; do NOT shard tiny work across cores
    )(feats, idxf, wslab)


@jax.jit
def global_autoencoder_forward(x, params):
    # x: (B, S, INPUT_DIM + 1); last column carries the embedding index (as float).
    feats = x[..., :INPUT_DIM].reshape(B, S * INPUT_DIM)      # (2, 128)
    idxf = x[..., INPUT_DIM]                                  # (2, 8)
    decoded, recon_flat = _fused_call(feats, idxf, params["wslab"])
    reconstructed = recon_flat.reshape(B, S, INPUT_DIM)
    return decoded, reconstructed


# ----------------- deterministic parameters + host-side slab packing -----------------
def _init_raw(key):
    keys = jax.random.split(key, 7)

    def linear(k, fin, fout):
        kw, kb = jax.random.split(k)
        bound = 1.0 / math.sqrt(fin)
        w = jax.random.uniform(kw, (fin, fout), jnp.float32, -bound, bound)
        b = jax.random.uniform(kb, (fout,), jnp.float32, -bound, bound)
        return w, b

    emb = jax.random.normal(keys[0], (NUM_VEC, EMB_DIM), jnp.float32)
    ew0, eb0 = linear(keys[1], INPUT_DIM + EMB_DIM, H1)
    ew1, eb1 = linear(keys[2], H1, LAT)
    dw0, db0 = linear(keys[3], LAT - 1, H2)
    dw1, db1 = linear(keys[4], H2, INPUT_DIM)
    gw0, gb0 = linear(keys[5], GF, HG)
    gw1, gb1 = linear(keys[6], HG, OUT_G)
    return (emb, ew0, eb0, ew1, eb1, dw0, db0, dw1, db1, gw0, gb0, gw1, gb1)


def _pack_params(raw):
    (emb, ew0, eb0, ew1, eb1, dw0, db0, dw1, db1, gw0, gb0, gw1, gb1) = (
        np.asarray(a, np.float32) for a in raw)
    ew0f = ew0[:INPUT_DIM]                   # feature part of the first encoder Linear
    embw = emb @ ew0[INPUT_DIM:]             # nn.Embedding folded into the Linear: (32, 16)
    slab = np.zeros((SLAB_ROWS, LW), np.float32)
    for s in range(S):
        slab[R_WF + s * INPUT_DIM:R_WF + (s + 1) * INPUT_DIM, s * H1:(s + 1) * H1] = ew0f
        slab[R_WE + s * NUM_VEC:R_WE + (s + 1) * NUM_VEC, s * H1:(s + 1) * H1] = embw
        slab[R_W1 + s * H1:R_W1 + (s + 1) * H1, s * LAT:(s + 1) * LAT] = ew1
        # local decoder consumes latent[..., :-1] -> row s*LAT+7 stays zero
        slab[R_WD0 + s * LAT:R_WD0 + s * LAT + (LAT - 1), s * H2:(s + 1) * H2] = dw0
        slab[R_WD1 + s * H2:R_WD1 + (s + 1) * H2, s * INPUT_DIM:(s + 1) * INPUT_DIM] = dw1
        # global branch consumes latent[..., :-2] -> rows s*LAT+6, s*LAT+7 stay zero
        slab[R_WG0 + s * LAT:R_WG0 + s * LAT + (LAT - 2), :HG] = gw0[s * (LAT - 2):(s + 1) * (LAT - 2)]
        slab[R_B0, s * H1:(s + 1) * H1] = eb0
        slab[R_B1, s * LAT:(s + 1) * LAT] = eb1
        slab[R_BD0, s * H2:(s + 1) * H2] = db0
        slab[R_BD1, s * INPUT_DIM:(s + 1) * INPUT_DIM] = db1
    slab[R_WG1:R_WG1 + HG, :OUT_G] = gw1
    slab[R_BG0, :HG] = gb0
    slab[R_BG1, :OUT_G] = gb1
    return jnp.asarray(slab)


def init_params(key):
    raw = _init_raw(key)
    return {"wslab": _pack_params(raw)}, raw


# ----------------- pure-JAX reference (mirrors the PyTorch forward) -----------------
def _reference_forward(x, raw):
    (emb, ew0, eb0, ew1, eb1, dw0, db0, dw1, db1, gw0, gb0, gw1, gb1) = raw
    gelu = lambda v: jax.nn.gelu(v, approximate=False)
    idx = x[..., -1].astype(jnp.int32)
    inp = jnp.concatenate([x[..., :-1], emb[idx]], axis=-1)           # (B, S, 24)
    latent = gelu(inp @ ew0 + eb0) @ ew1 + eb1                         # (B, S, 8)
    lat7 = latent[..., :-1]                                            # local AE returns this
    recon = gelu(lat7 @ dw0 + db0) @ dw1 + db1                         # (B, S, 16)
    z = gelu(gelu(lat7[..., :-1].reshape(x.shape[0], -1)))             # gelu->Identity->gelu
    decoded = gelu(z @ gw0 + gb0) @ gw1 + gb1                          # (B, 128)
    return decoded, recon


if __name__ == "__main__":
    key = jax.random.PRNGKey(0)
    k_feat, k_idx, k_par = jax.random.split(key, 3)
    feats = jax.random.normal(k_feat, (B, S, INPUT_DIM), jnp.float32)
    idx = jax.random.randint(k_idx, (B, S, 1), 0, NUM_VEC).astype(jnp.float32)
    x = jnp.concatenate([feats, idx], axis=-1)        # (B, S, INPUT_DIM + 1) = (2, 8, 17)

    params, raw = init_params(k_par)
    decoded, reconstructed = global_autoencoder_forward(x, params)
    jax.block_until_ready((decoded, reconstructed))

    assert decoded.shape == (B, OUT_G)                # (2, 128)
    assert reconstructed.shape == (B, S, INPUT_DIM)   # (2, 8, 16)
    assert bool(jnp.isfinite(decoded).all()) and bool(jnp.isfinite(reconstructed).all())

    # correctness check against a pure-JAX reference (loose tol: MXU f32 pass differences)
    ref_dec, ref_rec = _reference_forward(x, raw)
    np.testing.assert_allclose(np.asarray(decoded), np.asarray(ref_dec), rtol=2e-2, atol=2e-2)
    np.testing.assert_allclose(np.asarray(reconstructed), np.asarray(ref_rec), rtol=2e-2, atol=2e-2)

    print("KERNEL_OK")
</pallas_src>

<mosaic_0001>
module attributes {stable_mosaic.version = 11 : i64} {
  func.func @_fused_kernel(%arg0: i32, %arg1: memref<2x128xf32, #tpu.memory_space<vmem>>, %arg2: memref<2x8xf32, #tpu.memory_space<vmem>>, %arg3: memref<1072x128xf32, #tpu.memory_space<vmem>>, %arg4: memref<2x128xf32, #tpu.memory_space<vmem>>, %arg5: memref<2x128xf32, #tpu.memory_space<vmem>>) attributes {dimension_semantics = [#tpu.dimension_semantics<arbitrary>], iteration_bounds = array<i64: 1>, scalar_prefetch = 0 : i64, scratch_operands = 0 : i64, tpu.core_type = #tpu.core_type<tc>, window_params = [{pipeline_mode = #tpu.pipeline_mode<synchronous>, transform_indices = @transform_0, window_bounds = array<i64: 2, 128>}, {pipeline_mode = #tpu.pipeline_mode<synchronous>, transform_indices = @transform_1, window_bounds = array<i64: 2, 8>}, {pipeline_mode = #tpu.pipeline_mode<synchronous>, transform_indices = @transform_2, window_bounds = array<i64: 1072, 128>}, {pipeline_mode = #tpu.pipeline_mode<synchronous>, transform_indices = @transform_3, window_bounds = array<i64: 2, 128>}, {pipeline_mode = #tpu.pipeline_mode<synchronous>, transform_indices = @transform_4, window_bounds = array<i64: 2, 128>}]} {
    %c0 = arith.constant 0 : index
    %c0_0 = arith.constant 0 : index
    %0 = vector.load %arg1[%c0, %c0_0] : memref<2x128xf32, #tpu.memory_space<vmem>>, vector<2x128xf32>
    %c0_1 = arith.constant 0 : index
    %c0_2 = arith.constant 0 : index
    %1 = vector.load %arg2[%c0_1, %c0_2] : memref<2x8xf32, #tpu.memory_space<vmem>>, vector<2x8xf32>
    %2 = arith.fptosi %1 : vector<2x8xf32> to vector<2x8xi32>
    %3 = tpu.iota {dimensions = array<i32: 1>} : vector<2x8xi32>
    %c0_i32 = arith.constant 0 : i32
    %4 = vector.broadcast %c0_i32 : i32 to vector<2x8xi32>
    %5 = arith.cmpi sge, %2, %4 : vector<2x8xi32>
    %c32_i32 = arith.constant 32 : i32
    %6 = vector.broadcast %c32_i32 : i32 to vector<2x8xi32>
    %7 = arith.cmpi slt, %2, %6 : vector<2x8xi32>
    %8 = arith.andi %5, %7 : vector<2x8xi1>
    %c32_i32_3 = arith.constant 32 : i32
    %9 = vector.broadcast %c32_i32_3 : i32 to vector<2x8xi32>
    %10 = arith.muli %3, %9 : vector<2x8xi32>
    %11 = arith.addi %2, %10 : vector<2x8xi32>
    %c-1_i32 = arith.constant -1 : i32
    %12 = vector.broadcast %c-1_i32 : i32 to vector<2x8xi32>
    %13 = arith.select %8, %11, %12 : vector<2x8xi1>, vector<2x8xi32>
    %14 = arith.sitofp %13 : vector<2x8xi32> to vector<2x8xf32>
    %15 = tpu.iota {dimensions = array<i32: 0>} : vector<8x256xi32>
    %16 = tpu.iota {dimensions = array<i32: 1>} : vector<8x256xi32>
    %c32_i32_4 = arith.constant 32 : i32
    %17 = vector.broadcast %c32_i32_4 : i32 to vector<8x256xi32>
    %18 = arith.muli %15, %17 : vector<8x256xi32>
    %19 = arith.cmpi sge, %16, %18 : vector<8x256xi32>
    %c32_i32_5 = arith.constant 32 : i32
    %20 = vector.broadcast %c32_i32_5 : i32 to vector<8x256xi32>
    %21 = arith.addi %18, %20 : vector<8x256xi32>
    %22 = arith.cmpi slt, %16, %21 : vector<8x256xi32>
    %23 = arith.andi %19, %22 : vector<8x256xi1>
    %24 = arith.extui %23 : vector<8x256xi1> to vector<8x256xi32>
    %25 = arith.sitofp %24 : vector<8x256xi32> to vector<8x256xf32>
    %cst = arith.constant dense<0.000000e+00> : vector<2x256xf32>
    %26 = tpu.matmul %14, %25, %cst {dimension_numbers = #tpu.dot_dimension_numbers<[1], [0], [0], [1], [0, 0, 1, 1], [], []>} : vector<2x8xf32>, vector<8x256xf32>, vector<2x256xf32> -> vector<2x256xf32>
    %27 = tpu.iota {dimensions = array<i32: 1>} : vector<2x256xi32>
    %28 = arith.sitofp %27 : vector<2x256xi32> to vector<2x256xf32>
    %29 = arith.cmpf oeq, %28, %26 : vector<2x256xf32>
    %cst_6 = arith.constant 1.000000e+00 : f32
    %cst_7 = arith.constant 0.000000e+00 : f32
    %30 = vector.broadcast %cst_6 : f32 to vector<2x256xf32>
    %31 = vector.broadcast %cst_7 : f32 to vector<2x256xf32>
    %32 = arith.select %29, %30, %31 : vector<2x256xi1>, vector<2x256xf32>
    %c0_8 = arith.constant 0 : index
    %c0_9 = arith.constant 0 : index
    %33 = vector.load %arg3[%c0_8, %c0_9] : memref<1072x128xf32, #tpu.memory_space<vmem>>, vector<128x128xf32>
    %c128 = arith.constant 128 : index
    %c0_10 = arith.constant 0 : index
    %34 = vector.load %arg3[%c128, %c0_10] : memref<1072x128xf32, #tpu.memory_space<vmem>>, vector<256x128xf32>
    %c384 = arith.constant 384 : index
    %c0_11 = arith.constant 0 : index
    %35 = vector.load %arg3[%c384, %c0_11] : memref<1072x128xf32, #tpu.memory_space<vmem>>, vector<128x128xf32>
    %c512 = arith.constant 512 : index
    %c0_12 = arith.constant 0 : index
    %36 = vector.load %arg3[%c512, %c0_12] : memref<1072x128xf32, #tpu.memory_space<vmem>>, vector<128x128xf32>
    %c640 = arith.constant 640 : index
    %c0_13 = arith.constant 0 : index
    %37 = vector.load %arg3[%c640, %c0_13] : memref<1072x128xf32, #tpu.memory_space<vmem>>, vector<128x128xf32>
    %c768 = arith.constant 768 : index
    %c0_14 = arith.constant 0 : index
    %38 = vector.load %arg3[%c768, %c0_14] : memref<1072x128xf32, #tpu.memory_space<vmem>>, vector<128x128xf32>
    %c896 = arith.constant 896 : index
    %c0_15 = arith.constant 0 : index
    %39 = vector.load %arg3[%c896, %c0_15] : memref<1072x128xf32, #tpu.memory_space<vmem>>, vector<128x128xf32>
    %c1024 = arith.constant 1024 : index
    %c0_16 = arith.constant 0 : index
    %40 = vector.load %arg3[%c1024, %c0_16] : memref<1072x128xf32, #tpu.memory_space<vmem>>, vector<1x128xf32>
    %c1032 = arith.constant 1032 : index
    %c0_17 = arith.constant 0 : index
    %41 = vector.load %arg3[%c1032, %c0_17] : memref<1072x128xf32, #tpu.memory_space<vmem>>, vector<1x128xf32>
    %c1040 = arith.constant 1040 : index
    %c0_18 = arith.constant 0 : index
    %42 = vector.load %arg3[%c1040, %c0_18] : memref<1072x128xf32, #tpu.memory_space<vmem>>, vector<1x128xf32>
    %c1048 = arith.constant 1048 : index
    %c0_19 = arith.constant 0 : index
    %43 = vector.load %arg3[%c1048, %c0_19] : memref<1072x128xf32, #tpu.memory_space<vmem>>, vector<1x128xf32>
    %c1056 = arith.constant 1056 : index
    %c0_20 = arith.constant 0 : index
    %44 = vector.load %arg3[%c1056, %c0_20] : memref<1072x128xf32, #tpu.memory_space<vmem>>, vector<1x128xf32>
    %c1064 = arith.constant 1064 : index
    %c0_21 = arith.constant 0 : index
    %45 = vector.load %arg3[%c1064, %c0_21] : memref<1072x128xf32, #tpu.memory_space<vmem>>, vector<1x128xf32>
    %cst_22 = arith.constant dense<0.000000e+00> : vector<2x128xf32>
    %46 = tpu.matmul %0, %33, %cst_22 {dimension_numbers = #tpu.dot_dimension_numbers<[1], [0], [0], [1], [0, 0, 1, 1], [], []>} : vector<2x128xf32>, vector<128x128xf32>, vector<2x128xf32> -> vector<2x128xf32>
    %cst_23 = arith.constant dense<0.000000e+00> : vector<2x128xf32>
    %47 = tpu.matmul %32, %34, %cst_23 {dimension_numbers = #tpu.dot_dimension_numbers<[1], [0], [0], [1], [0, 0, 1, 1], [], []>} : vector<2x256xf32>, vector<256x128xf32>, vector<2x128xf32> -> vector<2x128xf32>
    %48 = arith.addf %46, %47 : vector<2x128xf32>
    %49 = vector.broadcast %40 : vector<1x128xf32> to vector<2x128xf32>
    %50 = arith.addf %48, %49 : vector<2x128xf32>
    %cst_24 = arith.constant 0.707106769 : f32
    %51 = vector.broadcast %cst_24 : f32 to vector<2x128xf32>
    %52 = arith.mulf %50, %51 : vector<2x128xf32>
    %53 = math.absf %52 : vector<2x128xf32>
    %cst_25 = arith.constant 0.327591091 : f32
    %54 = vector.broadcast %cst_25 : f32 to vector<2x128xf32>
    %55 = arith.mulf %54, %53 : vector<2x128xf32>
    %cst_26 = arith.constant 1.000000e+00 : f32
    %56 = vector.broadcast %cst_26 : f32 to vector<2x128xf32>
    %57 = arith.addf %56, %55 : vector<2x128xf32>
    %58 = tpu.reciprocal %57 {approx = true} : vector<2x128xf32> -> vector<2x128xf32>
    %59 = arith.mulf %57, %58 : vector<2x128xf32>
    %cst_27 = arith.constant 2.000000e+00 : f32
    %60 = vector.broadcast %cst_27 : f32 to vector<2x128xf32>
    %61 = arith.subf %60, %59 : vector<2x128xf32>
    %62 = arith.mulf %58, %61 : vector<2x128xf32>
    %cst_28 = arith.constant 1.06140542 : f32
    %63 = vector.broadcast %cst_28 : f32 to vector<2x128xf32>
    %64 = arith.mulf %62, %63 : vector<2x128xf32>
    %cst_29 = arith.constant -1.45315206 : f32
    %65 = vector.broadcast %cst_29 : f32 to vector<2x128xf32>
    %66 = arith.addf %65, %64 : vector<2x128xf32>
    %67 = arith.mulf %62, %66 : vector<2x128xf32>
    %cst_30 = arith.constant 1.42141378 : f32
    %68 = vector.broadcast %cst_30 : f32 to vector<2x128xf32>
    %69 = arith.addf %68, %67 : vector<2x128xf32>
    %70 = arith.mulf %62, %69 : vector<2x128xf32>
    %cst_31 = arith.constant -0.284496725 : f32
    %71 = vector.broadcast %cst_31 : f32 to vector<2x128xf32>
    %72 = arith.addf %71, %70 : vector<2x128xf32>
    %73 = arith.mulf %62, %72 : vector<2x128xf32>
    %cst_32 = arith.constant 0.254829586 : f32
    %74 = vector.broadcast %cst_32 : f32 to vector<2x128xf32>
    %75 = arith.addf %74, %73 : vector<2x128xf32>
    %76 = arith.mulf %62, %75 : vector<2x128xf32>
    %cst_33 = arith.constant 0.000000e+00 : f32
    %77 = vector.broadcast %cst_33 : f32 to vector<2x128xf32>
    %78 = arith.subf %77, %53 : vector<2x128xf32>
    %79 = arith.mulf %78, %53 : vector<2x128xf32>
    %80 = math.exp %79 : vector<2x128xf32>
    %81 = arith.mulf %76, %80 : vector<2x128xf32>
    %cst_34 = arith.constant 1.000000e+00 : f32
    %82 = vector.broadcast %cst_34 : f32 to vector<2x128xf32>
    %83 = arith.subf %82, %81 : vector<2x128xf32>
    %cst_35 = arith.constant 0.000000e+00 : f32
    %84 = vector.broadcast %cst_35 : f32 to vector<2x128xf32>
    %85 = arith.cmpf olt, %52, %84 : vector<2x128xf32>
    %cst_36 = arith.constant 0.000000e+00 : f32
    %86 = vector.broadcast %cst_36 : f32 to vector<2x128xf32>
    %87 = arith.subf %86, %83 : vector<2x128xf32>
    %88 = arith.select %85, %87, %83 : vector<2x128xi1>, vector<2x128xf32>
    %cst_37 = arith.constant 5.000000e-01 : f32
    %89 = vector.broadcast %cst_37 : f32 to vector<2x128xf32>
    %90 = arith.mulf %89, %50 : vector<2x128xf32>
    %cst_38 = arith.constant 1.000000e+00 : f32
    %91 = vector.broadcast %cst_38 : f32 to vector<2x128xf32>
    %92 = arith.addf %91, %88 : vector<2x128xf32>
    %93 = arith.mulf %90, %92 : vector<2x128xf32>
    %cst_39 = arith.constant dense<0.000000e+00> : vector<2x128xf32>
    %94 = tpu.matmul %93, %35, %cst_39 {dimension_numbers = #tpu.dot_dimension_numbers<[1], [0], [0], [1], [0, 0, 1, 1], [], []>} : vector<2x128xf32>, vector<128x128xf32>, vector<2x128xf32> -> vector<2x128xf32>
    %95 = vector.broadcast %41 : vector<1x128xf32> to vector<2x128xf32>
    %96 = arith.addf %94, %95 : vector<2x128xf32>
    %cst_40 = arith.constant 0.707106769 : f32
    %97 = vector.broadcast %cst_40 : f32 to vector<2x128xf32>
    %98 = arith.mulf %96, %97 : vector<2x128xf32>
    %99 = math.absf %98 : vector<2x128xf32>
    %cst_41 = arith.constant 0.327591091 : f32
    %100 = vector.broadcast %cst_41 : f32 to vector<2x128xf32>
    %101 = arith.mulf %100, %99 : vector<2x128xf32>
    %cst_42 = arith.constant 1.000000e+00 : f32
    %102 = vector.broadcast %cst_42 : f32 to vector<2x128xf32>
    %103 = arith.addf %102, %101 : vector<2x128xf32>
    %104 = tpu.reciprocal %103 {approx = true} : vector<2x128xf32> -> vector<2x128xf32>
    %105 = arith.mulf %103, %104 : vector<2x128xf32>
    %cst_43 = arith.constant 2.000000e+00 : f32
    %106 = vector.broadcast %cst_43 : f32 to vector<2x128xf32>
    %107 = arith.subf %106, %105 : vector<2x128xf32>
    %108 = arith.mulf %104, %107 : vector<2x128xf32>
    %cst_44 = arith.constant 1.06140542 : f32
    %109 = vector.broadcast %cst_44 : f32 to vector<2x128xf32>
    %110 = arith.mulf %108, %109 : vector<2x128xf32>
    %cst_45 = arith.constant -1.45315206 : f32
    %111 = vector.broadcast %cst_45 : f32 to vector<2x128xf32>
    %112 = arith.addf %111, %110 : vector<2x128xf32>
    %113 = arith.mulf %108, %112 : vector<2x128xf32>
    %cst_46 = arith.constant 1.42141378 : f32
    %114 = vector.broadcast %cst_46 : f32 to vector<2x128xf32>
    %115 = arith.addf %114, %113 : vector<2x128xf32>
    %116 = arith.mulf %108, %115 : vector<2x128xf32>
    %cst_47 = arith.constant -0.284496725 : f32
    %117 = vector.broadcast %cst_47 : f32 to vector<2x128xf32>
    %118 = arith.addf %117, %116 : vector<2x128xf32>
    %119 = arith.mulf %108, %118 : vector<2x128xf32>
    %cst_48 = arith.constant 0.254829586 : f32
    %120 = vector.broadcast %cst_48 : f32 to vector<2x128xf32>
    %121 = arith.addf %120, %119 : vector<2x128xf32>
    %122 = arith.mulf %108, %121 : vector<2x128xf32>
    %cst_49 = arith.constant 0.000000e+00 : f32
    %123 = vector.broadcast %cst_49 : f32 to vector<2x128xf32>
    %124 = arith.subf %123, %99 : vector<2x128xf32>
    %125 = arith.mulf %124, %99 : vector<2x128xf32>
    %126 = math.exp %125 : vector<2x128xf32>
    %127 = arith.mulf %122, %126 : vector<2x128xf32>
    %cst_50 = arith.constant 1.000000e+00 : f32
    %128 = vector.broadcast %cst_50 : f32 to vector<2x128xf32>
    %129 = arith.subf %128, %127 : vector<2x128xf32>
    %cst_51 = arith.constant 0.000000e+00 : f32
    %130 = vector.broadcast %cst_51 : f32 to vector<2x128xf32>
    %131 = arith.cmpf olt, %98, %130 : vector<2x128xf32>
    %cst_52 = arith.constant 0.000000e+00 : f32
    %132 = vector.broadcast %cst_52 : f32 to vector<2x128xf32>
    %133 = arith.subf %132, %129 : vector<2x128xf32>
    %134 = arith.select %131, %133, %129 : vector<2x128xi1>, vector<2x128xf32>
    %cst_53 = arith.constant 5.000000e-01 : f32
    %135 = vector.broadcast %cst_53 : f32 to vector<2x128xf32>
    %136 = arith.mulf %135, %96 : vector<2x128xf32>
    %cst_54 = arith.constant 1.000000e+00 : f32
    %137 = vector.broadcast %cst_54 : f32 to vector<2x128xf32>
    %138 = arith.addf %137, %134 : vector<2x128xf32>
    %139 = arith.mulf %136, %138 : vector<2x128xf32>
    %cst_55 = arith.constant 0.707106769 : f32
    %140 = vector.broadcast %cst_55 : f32 to vector<2x128xf32>
    %141 = arith.mulf %139, %140 : vector<2x128xf32>
    %142 = math.absf %141 : vector<2x128xf32>
    %cst_56 = arith.constant 0.327591091 : f32
    %143 = vector.broadcast %cst_56 : f32 to vector<2x128xf32>
    %144 = arith.mulf %143, %142 : vector<2x128xf32>
    %cst_57 = arith.constant 1.000000e+00 : f32
    %145 = vector.broadcast %cst_57 : f32 to vector<2x128xf32>
    %146 = arith.addf %145, %144 : vector<2x128xf32>
    %147 = tpu.reciprocal %146 {approx = true} : vector<2x128xf32> -> vector<2x128xf32>
    %148 = arith.mulf %146, %147 : vector<2x128xf32>
    %cst_58 = arith.constant 2.000000e+00 : f32
    %149 = vector.broadcast %cst_58 : f32 to vector<2x128xf32>
    %150 = arith.subf %149, %148 : vector<2x128xf32>
    %151 = arith.mulf %147, %150 : vector<2x128xf32>
    %cst_59 = arith.constant 1.06140542 : f32
    %152 = vector.broadcast %cst_59 : f32 to vector<2x128xf32>
    %153 = arith.mulf %151, %152 : vector<2x128xf32>
    %cst_60 = arith.constant -1.45315206 : f32
    %154 = vector.broadcast %cst_60 : f32 to vector<2x128xf32>
    %155 = arith.addf %154, %153 : vector<2x128xf32>
    %156 = arith.mulf %151, %155 : vector<2x128xf32>
    %cst_61 = arith.constant 1.42141378 : f32
    %157 = vector.broadcast %cst_61 : f32 to vector<2x128xf32>
    %158 = arith.addf %157, %156 : vector<2x128xf32>
    %159 = arith.mulf %151, %158 : vector<2x128xf32>
    %cst_62 = arith.constant -0.284496725 : f32
    %160 = vector.broadcast %cst_62 : f32 to vector<2x128xf32>
    %161 = arith.addf %160, %159 : vector<2x128xf32>
    %162 = arith.mulf %151, %161 : vector<2x128xf32>
    %cst_63 = arith.constant 0.254829586 : f32
    %163 = vector.broadcast %cst_63 : f32 to vector<2x128xf32>
    %164 = arith.addf %163, %162 : vector<2x128xf32>
    %165 = arith.mulf %151, %164 : vector<2x128xf32>
    %cst_64 = arith.constant 0.000000e+00 : f32
    %166 = vector.broadcast %cst_64 : f32 to vector<2x128xf32>
    %167 = arith.subf %166, %142 : vector<2x128xf32>
    %168 = arith.mulf %167, %142 : vector<2x128xf32>
    %169 = math.exp %168 : vector<2x128xf32>
    %170 = arith.mulf %165, %169 : vector<2x128xf32>
    %cst_65 = arith.constant 1.000000e+00 : f32
    %171 = vector.broadcast %cst_65 : f32 to vector<2x128xf32>
    %172 = arith.subf %171, %170 : vector<2x128xf32>
    %cst_66 = arith.constant 0.000000e+00 : f32
    %173 = vector.broadcast %cst_66 : f32 to vector<2x128xf32>
    %174 = arith.cmpf olt, %141, %173 : vector<2x128xf32>
    %cst_67 = arith.constant 0.000000e+00 : f32
    %175 = vector.broadcast %cst_67 : f32 to vector<2x128xf32>
    %176 = arith.subf %175, %172 : vector<2x128xf32>
    %177 = arith.select %174, %176, %172 : vector<2x128xi1>, vector<2x128xf32>
    %cst_68 = arith.constant 5.000000e-01 : f32
    %178 = vector.broadcast %cst_68 : f32 to vector<2x128xf32>
    %179 = arith.mulf %178, %139 : vector<2x128xf32>
    %cst_69 = arith.constant 1.000000e+00 : f32
    %180 = vector.broadcast %cst_69 : f32 to vector<2x128xf32>
    %181 = arith.addf %180, %177 : vector<2x128xf32>
    %182 = arith.mulf %179, %181 : vector<2x128xf32>
    %cst_70 = arith.constant dense<0.000000e+00> : vector<2x128xf32>
    %183 = tpu.matmul %96, %36, %cst_70 {dimension_numbers = #tpu.dot_dimension_numbers<[1], [0], [0], [1], [0, 0, 1, 1], [], []>} : vector<2x128xf32>, vector<128x128xf32>, vector<2x128xf32> -> vector<2x128xf32>
    %184 = vector.broadcast %42 : vector<1x128xf32> to vector<2x128xf32>
    %185 = arith.addf %183, %184 : vector<2x128xf32>
    %cst_71 = arith.constant dense<0.000000e+00> : vector<2x128xf32>
    %186 = tpu.matmul %182, %38, %cst_71 {dimension_numbers = #tpu.dot_dimension_numbers<[1], [0], [0], [1], [0, 0, 1, 1], [], []>} : vector<2x128xf32>, vector<128x128xf32>, vector<2x128xf32> -> vector<2x128xf32>
    %187 = vector.broadcast %44 : vector<1x128xf32> to vector<2x128xf32>
    %188 = arith.addf %186, %187 : vector<2x128xf32>
    %cst_72 = arith.constant 0.707106769 : f32
    %189 = vector.broadcast %cst_72 : f32 to vector<2x128xf32>
    %190 = arith.mulf %185, %189 : vector<2x128xf32>
    %191 = math.absf %190 : vector<2x128xf32>
    %cst_73 = arith.constant 0.327591091 : f32
    %192 = vector.broadcast %cst_73 : f32 to vector<2x128xf32>
    %193 = arith.mulf %192, %191 : vector<2x128xf32>
    %cst_74 = arith.constant 1.000000e+00 : f32
    %194 = vector.broadcast %cst_74 : f32 to vector<2x128xf32>
    %195 = arith.addf %194, %193 : vector<2x128xf32>
    %196 = tpu.reciprocal %195 {approx = true} : vector<2x128xf32> -> vector<2x128xf32>
    %197 = arith.mulf %195, %196 : vector<2x128xf32>
    %cst_75 = arith.constant 2.000000e+00 : f32
    %198 = vector.broadcast %cst_75 : f32 to vector<2x128xf32>
    %199 = arith.subf %198, %197 : vector<2x128xf32>
    %200 = arith.mulf %196, %199 : vector<2x128xf32>
    %cst_76 = arith.constant 1.06140542 : f32
    %201 = vector.broadcast %cst_76 : f32 to vector<2x128xf32>
    %202 = arith.mulf %200, %201 : vector<2x128xf32>
    %cst_77 = arith.constant -1.45315206 : f32
    %203 = vector.broadcast %cst_77 : f32 to vector<2x128xf32>
    %204 = arith.addf %203, %202 : vector<2x128xf32>
    %205 = arith.mulf %200, %204 : vector<2x128xf32>
    %cst_78 = arith.constant 1.42141378 : f32
    %206 = vector.broadcast %cst_78 : f32 to vector<2x128xf32>
    %207 = arith.addf %206, %205 : vector<2x128xf32>
    %208 = arith.mulf %200, %207 : vector<2x128xf32>
    %cst_79 = arith.constant -0.284496725 : f32
    %209 = vector.broadcast %cst_79 : f32 to vector<2x128xf32>
    %210 = arith.addf %209, %208 : vector<2x128xf32>
    %211 = arith.mulf %200, %210 : vector<2x128xf32>
    %cst_80 = arith.constant 0.254829586 : f32
    %212 = vector.broadcast %cst_80 : f32 to vector<2x128xf32>
    %213 = arith.addf %212, %211 : vector<2x128xf32>
    %214 = arith.mulf %200, %213 : vector<2x128xf32>
    %cst_81 = arith.constant 0.000000e+00 : f32
    %215 = vector.broadcast %cst_81 : f32 to vector<2x128xf32>
    %216 = arith.subf %215, %191 : vector<2x128xf32>
    %217 = arith.mulf %216, %191 : vector<2x128xf32>
    %218 = math.exp %217 : vector<2x128xf32>
    %219 = arith.mulf %214, %218 : vector<2x128xf32>
    %cst_82 = arith.constant 1.000000e+00 : f32
    %220 = vector.broadcast %cst_82 : f32 to vector<2x128xf32>
    %221 = arith.subf %220, %219 : vector<2x128xf32>
    %cst_83 = arith.constant 0.000000e+00 : f32
    %222 = vector.broadcast %cst_83 : f32 to vector<2x128xf32>
    %223 = arith.cmpf olt, %190, %222 : vector<2x128xf32>
    %cst_84 = arith.constant 0.000000e+00 : f32
    %224 = vector.broadcast %cst_84 : f32 to vector<2x128xf32>
    %225 = arith.subf %224, %221 : vector<2x128xf32>
    %226 = arith.select %223, %225, %221 : vector<2x128xi1>, vector<2x128xf32>
    %cst_85 = arith.constant 5.000000e-01 : f32
    %227 = vector.broadcast %cst_85 : f32 to vector<2x128xf32>
    %228 = arith.mulf %227, %185 : vector<2x128xf32>
    %cst_86 = arith.constant 1.000000e+00 : f32
    %229 = vector.broadcast %cst_86 : f32 to vector<2x128xf32>
    %230 = arith.addf %229, %226 : vector<2x128xf32>
    %231 = arith.mulf %228, %230 : vector<2x128xf32>
    %cst_87 = arith.constant 0.707106769 : f32
    %232 = vector.broadcast %cst_87 : f32 to vector<2x128xf32>
    %233 = arith.mulf %188, %232 : vector<2x128xf32>
    %234 = math.absf %233 : vector<2x128xf32>
    %cst_88 = arith.constant 0.327591091 : f32
    %235 = vector.broadcast %cst_88 : f32 to vector<2x128xf32>
    %236 = arith.mulf %235, %234 : vector<2x128xf32>
    %cst_89 = arith.constant 1.000000e+00 : f32
    %237 = vector.broadcast %cst_89 : f32 to vector<2x128xf32>
    %238 = arith.addf %237, %236 : vector<2x128xf32>
    %239 = tpu.reciprocal %238 {approx = true} : vector<2x128xf32> -> vector<2x128xf32>
    %240 = arith.mulf %238, %239 : vector<2x128xf32>
    %cst_90 = arith.constant 2.000000e+00 : f32
    %241 = vector.broadcast %cst_90 : f32 to vector<2x128xf32>
    %242 = arith.subf %241, %240 : vector<2x128xf32>
    %243 = arith.mulf %239, %242 : vector<2x128xf32>
    %cst_91 = arith.constant 1.06140542 : f32
    %244 = vector.broadcast %cst_91 : f32 to vector<2x128xf32>
    %245 = arith.mulf %243, %244 : vector<2x128xf32>
    %cst_92 = arith.constant -1.45315206 : f32
    %246 = vector.broadcast %cst_92 : f32 to vector<2x128xf32>
    %247 = arith.addf %246, %245 : vector<2x128xf32>
    %248 = arith.mulf %243, %247 : vector<2x128xf32>
    %cst_93 = arith.constant 1.42141378 : f32
    %249 = vector.broadcast %cst_93 : f32 to vector<2x128xf32>
    %250 = arith.addf %249, %248 : vector<2x128xf32>
    %251 = arith.mulf %243, %250 : vector<2x128xf32>
    %cst_94 = arith.constant -0.284496725 : f32
    %252 = vector.broadcast %cst_94 : f32 to vector<2x128xf32>
    %253 = arith.addf %252, %251 : vector<2x128xf32>
    %254 = arith.mulf %243, %253 : vector<2x128xf32>
    %cst_95 = arith.constant 0.254829586 : f32
    %255 = vector.broadcast %cst_95 : f32 to vector<2x128xf32>
    %256 = arith.addf %255, %254 : vector<2x128xf32>
    %257 = arith.mulf %243, %256 : vector<2x128xf32>
    %cst_96 = arith.constant 0.000000e+00 : f32
    %258 = vector.broadcast %cst_96 : f32 to vector<2x128xf32>
    %259 = arith.subf %258, %234 : vector<2x128xf32>
    %260 = arith.mulf %259, %234 : vector<2x128xf32>
    %261 = math.exp %260 : vector<2x128xf32>
    %262 = arith.mulf %257, %261 : vector<2x128xf32>
    %cst_97 = arith.constant 1.000000e+00 : f32
    %263 = vector.broadcast %cst_97 : f32 to vector<2x128xf32>
    %264 = arith.subf %263, %262 : vector<2x128xf32>
    %cst_98 = arith.constant 0.000000e+00 : f32
    %265 = vector.broadcast %cst_98 : f32 to vector<2x128xf32>
    %266 = arith.cmpf olt, %233, %265 : vector<2x128xf32>
    %cst_99 = arith.constant 0.000000e+00 : f32
    %267 = vector.broadcast %cst_99 : f32 to vector<2x128xf32>
    %268 = arith.subf %267, %264 : vector<2x128xf32>
    %269 = arith.select %266, %268, %264 : vector<2x128xi1>, vector<2x128xf32>
    %cst_100 = arith.constant 5.000000e-01 : f32
    %270 = vector.broadcast %cst_100 : f32 to vector<2x128xf32>
    %271 = arith.mulf %270, %188 : vector<2x128xf32>
    %cst_101 = arith.constant 1.000000e+00 : f32
    %272 = vector.broadcast %cst_101 : f32 to vector<2x128xf32>
    %273 = arith.addf %272, %269 : vector<2x128xf32>
    %274 = arith.mulf %271, %273 : vector<2x128xf32>
    %cst_102 = arith.constant dense<0.000000e+00> : vector<2x128xf32>
    %275 = tpu.matmul %231, %37, %cst_102 {dimension_numbers = #tpu.dot_dimension_numbers<[1], [0], [0], [1], [0, 0, 1, 1], [], []>} : vector<2x128xf32>, vector<128x128xf32>, vector<2x128xf32> -> vector<2x128xf32>
    %276 = vector.broadcast %43 : vector<1x128xf32> to vector<2x128xf32>
    %277 = arith.addf %275, %276 : vector<2x128xf32>
    %c0_103 = arith.constant 0 : index
    %c0_104 = arith.constant 0 : index
    %278 = vector.load %arg5[%c0_103, %c0_104] : memref<2x128xf32, #tpu.memory_space<vmem>>, vector<2x128xf32>
    tpu.vector_store %arg5[%c0_103, %c0_104], %277 {strides = array<i32>} : memref<2x128xf32, #tpu.memory_space<vmem>>, vector<2x128xf32>,
    %cst_105 = arith.constant dense<0.000000e+00> : vector<2x128xf32>
    %279 = tpu.matmul %274, %39, %cst_105 {dimension_numbers = #tpu.dot_dimension_numbers<[1], [0], [0], [1], [0, 0, 1, 1], [], []>} : vector<2x128xf32>, vector<128x128xf32>, vector<2x128xf32> -> vector<2x128xf32>
    %280 = vector.broadcast %45 : vector<1x128xf32> to vector<2x128xf32>
    %281 = arith.addf %279, %280 : vector<2x128xf32>
    %c0_106 = arith.constant 0 : index
    %c0_107 = arith.constant 0 : index
    %282 = vector.load %arg4[%c0_106, %c0_107] : memref<2x128xf32, #tpu.memory_space<vmem>>, vector<2x128xf32>
    tpu.vector_store %arg4[%c0_106, %c0_107], %281 {strides = array<i32>} : memref<2x128xf32, #tpu.memory_space<vmem>>, vector<2x128xf32>,
    return
  }
  func.func @transform_0(%arg0: i32) -> (i32, i32) {
    %c0_i32 = arith.constant 0 : i32
    %c0_i32_0 = arith.constant 0 : i32
    %c0_i32_1 = arith.constant 0 : i32
    return %c0_i32, %c0_i32_0 : i32, i32
  }
  func.func @transform_1(%arg0: i32) -> (i32, i32) {
    %c0_i32 = arith.constant 0 : i32
    %c0_i32_0 = arith.constant 0 : i32
    %c0_i32_1 = arith.constant 0 : i32
    return %c0_i32, %c0_i32_0 : i32, i32
  }
  func.func @transform_2(%arg0: i32) -> (i32, i32) {
    %c0_i32 = arith.constant 0 : i32
    %c0_i32_0 = arith.constant 0 : i32
    %c0_i32_1 = arith.constant 0 : i32
    return %c0_i32, %c0_i32_0 : i32, i32
  }
  func.func @transform_3(%arg0: i32) -> (i32, i32) {
    %c0_i32 = arith.constant 0 : i32
    %c0_i32_0 = arith.constant 0 : i32
    %c0_i32_1 = arith.constant 0 : i32
    return %c0_i32, %c0_i32_0 : i32, i32
  }
  func.func @transform_4(%arg0: i32) -> (i32, i32) {
    %c0_i32 = arith.constant 0 : i32
    %c0_i32_0 = arith.constant 0 : i32
    %c0_i32_1 = arith.constant 0 : i32
    return %c0_i32, %c0_i32_0 : i32, i32
  }
}

</mosaic_0001>

<bundles_post_ra>
// kernel: global_autoencoder_forward.1
= control target key start
LH: loop header
LB: loop body
LE: loop exit
PB: predicated region body
PF: predicated region fallthrough
CT: control target
= control target key end

     0   :  { %10 = vsyncpa [#allocation3], 0  ;;  %s1572_s0 = inlined_call_operand.vmem [shape: f32[2,128], index: 0, kind: input, shape index: {}]   ;;  %s1573_s1 = inlined_call_operand.vmem [shape: f32[2,8], index: 1, kind: input, shape index: {}]   ;;  %s1574_s2 = inlined_call_operand.hbm [shape: f32[1072,128], index: 2, kind: input, shape index: {}]   ;;  %s1575_s3 = inlined_call_operand.hbm [shape: f32[2,128], index: 3, kind: output, shape index: {0}]   ;;  %s1576_s4 = inlined_call_operand.vmem [shape: f32[2,128], index: 4, kind: output, shape index: {1}]  }
   0x1   :  { %11 = vsyncpa [#allocation4], 0  ;;  %s1387_s15 = smov [#allocation2]  }
   0x2   :  { %s21_s16 = sshll.u32 %s1387_s15, 4  ;;  %s22_s16 = int_to_ptr.vmem [resolvable:$true] %s21_s16 }
   0x3   :  { %s1351_s17 = scalar_lea.vmem %s22_s16, 17152  ;;  %p1356_p1 = scmp.lt.s32.totalorder %s22_s16, %s22_s16 }
   0x4   :  { %p1352_p0 = scmp.ne.s32.totalorder %s22_s16, %s1351_s17  ;;  %p1357_p2 = scmp.lt.s32.totalorder %s1351_s17, %s1351_s17 }
   0x6   :  { %p1358_p3 = por %p1357_p2, %p1356_p1 }
   0x8   :  { %p1359_p4 = pnand %p1358_p3, %p1352_p0 }
   0xa   :  { %1362 = shalt.err (!%p1359_p4)
}
   0xb   :  { %s1388_s18 = smov 128   ;;  %s1389_s19 = smov 8  }
   0xc   :  { %27 = dma.hbm_to_vmem [thread:$0]  %s1574_s2, 17152, %s22_s16, [#allocation3], %s1388_s18, %s1388_s18, %s1389_s19  }
   0xd   :  { %1383 = dma.done.wait [#allocation3], 17152  }
   0xe   :  { %1384 = vsyncadd [#allocation3], 4294950144  ;;  %v34_v0 = vlaneseq  ;;  %v1390_v1 = vmov 0.0   ;;  %v32_v7 = vld [vmem:[%s1573_s1] sm:$0x3]  ;;  %v186_v8 = vld [vmem:[#allocation2 + $0x178] sm:$0xff] }
   0xf   :  { %126 = vmatprep.mubr.f32.mxu0 %v1390_v1  ;;  %v170_v9 = vld [vmem:[#allocation2 + $0xf8] sm:$0xff]  ;;  %v1314_v10 = vtrunc.f32 %v32_v7  ;;  %967 = vmatprep.subr.mxu1 %v186_v8  ;;  %v185_v12 = vld [vmem:[#allocation2 + $0x170] sm:$0xff]  ;;  %v184_v14 = vld [vmem:[#allocation2 + $0x168] sm:$0xff]  ;;  %v1391_v15 = vmov 1.0   ;;  %vm58_vm9 = vcmask 64512   ;;  %vm1392_vm10 = vmmov 0  }
  0x10   :  { %v1423_v2 = vand.u32 127, %v34_v0  ;;  %v44_v3 = vshrl.u32 %v34_v0, 7  ;;  %v169_v13 = vld [vmem:[#allocation2 + $0xf0] sm:$0xff]  ;;  %968 = vmatpush3.msra.mxu1 %v170_v9  ;;  %v168_v17 = vld [vmem:[#allocation2 + $0xe8] sm:$0xff]  ;;  %v183_v18 = vld [vmem:[#allocation2 + $0x160] sm:$0xff]  ;;  %s1393_s25 = smov [#allocation5]  }
  0x11   :  { %v1315_v16 = vcvt.f32.s32 %v1314_v10  ;;  %969 = vmatprep.subr.mxu1 %v185_v12  ;;  %v167_v20 = vld [vmem:[#allocation2 + $0xe0] sm:$0xff]  ;;  %v182_v21 = vld [vmem:[#allocation2 + $0x158] sm:$0xff]  ;;  %v181_v26 = vld [vmem:[#allocation2 + $0x150] sm:$0xff]  ;;  %s941_s26 = sshll.u32 %s1393_s25, 4  ;;  %s942_s26 = int_to_ptr.vmem [resolvable:$true] %s941_s26 }
  0x12   :  { %v1426_v4 = vadd.s32 128, %v1423_v2  ;;  %v46_v5 = vmul.u32 32, %v44_v3  ;;  %v39_v11 = vmul.u32 32, %v1423_v2  ;;  %970 = vmatpush3.msra.mxu1 %v169_v13  ;;  %v166_v23 = vld [vmem:[#allocation2 + $0xd8] sm:$0xff]  ;;  %v165_v27 = vld [vmem:[#allocation2 + $0xd0] sm:$0xff]  ;;  %v180_v29 = vld [vmem:[#allocation2 + $0x148] sm:$0xff]  ;;  %p1368_p6 = scmp.lt.s32.totalorder %s942_s26, %s942_s26 }
  0x13   :  { %vm36_vm6 = vcmp.ge.s32.totalorder %v1315_v16, 0  ;;  %vm37_vm7 = vcmp.lt.s32.totalorder %v1315_v16, 32  ;;  %971 = vmatprep.subr.mxu1 %v184_v14  ;;  %v154_v25 = vld [vmem:[#allocation2 + $0x78] sm:$0xff]  ;;  %v153_v28 = vld [vmem:[#allocation2 + $0x70] sm:$0xff]  ;;  %v164_v30 = vld [vmem:[#allocation2 + $0xc8] sm:$0xff]  ;;  %s1363_s27 = scalar_lea.vmem %s942_s26, 32 }
  0x14   :  { %vm48_vm0 = vcmp.ge.s32.totalorder %v1426_v4, %v46_v5  ;;  %v49_v6 = vadd.s32 32, %v46_v5  ;;  %vm47_vm1 = vcmp.ge.s32.totalorder %v1423_v2, %v46_v5  ;;  %v40_v19 = vadd.s32 %v1315_v16, %v39_v11  ;;  %vm38_vm8 = vmand %vm36_vm6, %vm37_vm7  ;;  %972 = vmatpush3.msra.mxu1 %v168_v17  ;;  %v152_v31 = vld [vmem:[#allocation2 + $0x68] sm:$0xff]  ;;  %v179_v32 = vld [vmem:[#allocation2 + $0x140] sm:$0xff]  ;;  %p1364_p5 = scmp.ne.s32.totalorder %s942_s26, %s1363_s27  ;;  %p1369_p7 = scmp.lt.s32.totalorder %s1363_s27, %s1363_s27 }
  0x15   :  { %973 = vmatprep.subr.mxu1 %v183_v18  ;;  %v163_v33 = vld [vmem:[#allocation2 + $0xc0] sm:$0xff]  ;;  %v178_v35 = vld [vmem:[#allocation2 + $0x138] sm:$0xff]  ;;  %v177_v38 = vld [vmem:[#allocation2 + $0x130] sm:$0xff]  ;;  %v134_v0 = vcvt.s32.f32 %v1426_v4  ;;  %v133_v5 = vcvt.s32.f32 %v1423_v2 }
  0x16   :  { %vm51_vm2 = vcmp.lt.s32.totalorder %v1426_v4, %v49_v6  ;;  %vm50_vm3 = vcmp.lt.s32.totalorder %v1423_v2, %v49_v6  ;;  %v41_v22 = vsel %vm38_vm8, %v40_v19, 4294967295  ;;  %974 = vmatpush3.msra.mxu1 %v167_v20  ;;  %v151_v34 = vld [vmem:[#allocation2 + $0x60] sm:$0xff]  ;;  %v162_v36 = vld [vmem:[#allocation2 + $0xb8] sm:$0xff]  ;;  %v161_v39 = vld [vmem:[#allocation2 + $0xb0] sm:$0xff]  ;;  %p1370_p8 = por %p1369_p7, %p1368_p6 }
  0x17   :  { %vm53_vm4 = vmand %vm48_vm0, %vm51_vm2  ;;  %v42_v24 = vcvt.s32.f32 %v41_v22  ;;  %975 = vmatprep.subr.mxu1 %v182_v21  ;;  %v150_v37 = vld [vmem:[#allocation2 + $0x58] sm:$0xff]  ;;  %v149_v40 = vld [vmem:[#allocation2 + $0x50] sm:$0xff] }
  0x18   :  { %956 = vmatprep.subr.msk.mxu0 %vm53_vm4, %v1391_v15  ;;  %vm52_vm5 = vmand %vm47_vm1, %vm50_vm3  ;;  %976 = vmatpush3.msra.mxu1 %v166_v23  ;;  %v176_v41 = vld [vmem:[#allocation2 + $0x128] sm:$0xff]  ;;  %v175_v44 = vld [vmem:[#allocation2 + $0x120] sm:$0xff]  ;;  %p1371_p9 = pnand %p1370_p8, %p1364_p5 }
  0x19   :  { %957 = vmatpush1.msk.msra.mxu0 %vm52_vm5, %v1391_v15  ;;  %977 = vmatprep.subr.mxu1 %v181_v26  ;;  %v160_v42 = vld [vmem:[#allocation2 + $0xa8] sm:$0xff]  ;;  %v159_v45 = vld [vmem:[#allocation2 + $0xa0] sm:$0xff]  ;;  %v174_v47 = vld [vmem:[#allocation2 + $0x118] sm:$0xff] }
  0x1a   :  { %1104 = vmatprep.subr.mxu0 %v1390_v1  ;;  %958 = vmatmul.mubr.msk.f32.vlgmr.msra.gmra.mxu0 %vm58_vm9, %v42_v24  ;;  %v148_v43 = vld [vmem:[#allocation2 + $0x48] sm:$0xff]  ;;  %v147_v46 = vld [vmem:[#allocation2 + $0x40] sm:$0xff]  ;;  %v158_v48 = vld [vmem:[#allocation2 + $0x98] sm:$0xff] }
  0x1b   :  { %1105 = vmatpush3.msra.mxu0 %v154_v25  ;;  %978 = vmatpush3.msra.mxu1 %v165_v27  ;;  %v146_v49 = vld [vmem:[#allocation2 + $0x38] sm:$0xff]  ;;  %v173_v50 = vld [vmem:[#allocation2 + $0x110] sm:$0xff]  ;;  %v144_v52 = vld [vmem:[#allocation2 + $0x28] sm:$0xff] }
  0x1c   :  { %1106 = vmatprep.subr.mxu0 %v1390_v1  ;;  %979 = vmatprep.subr.mxu1 %v180_v29  ;;  %v145_v51 = vld [vmem:[#allocation2 + $0x30] sm:$0xff]  ;;  %v143_v53 = vld [vmem:[#allocation2 + $0x20] sm:$0xff]  ;;  %v142_v55 = vld [vmem:[#allocation2 + $0x18] sm:$0xff] }
  0x1d   :  { %1107 = vmatpush3.msra.mxu0 %v153_v28  ;;  %980 = vmatpush3.msra.mxu1 %v164_v30  ;;  %v157_v54 = vld [vmem:[#allocation2 + $0x90] sm:$0xff]  ;;  %v172_v56 = vld [vmem:[#allocation2 + $0x108] sm:$0xff]  ;;  %v171_v59 = vld [vmem:[#allocation2 + $0x100] sm:$0xff] }
  0x1e   :  { %1108 = vmatprep.subr.mxu0 %v1390_v1  ;;  %981 = vmatprep.subr.mxu1 %v179_v32  ;;  %v156_v57 = vld [vmem:[#allocation2 + $0x88] sm:$0xff]  ;;  %v141_v58 = vld [vmem:[#allocation2 + $0x10] sm:$0xff]  ;;  %v155_v60 = vld [vmem:[#allocation2 + $0x80] sm:$0xff] }
  0x1f   :  { %1109 = vmatpush3.msra.mxu0 %v152_v31  ;;  %982 = vmatpush3.msra.mxu1 %v163_v33  ;;  %v140_v61 = vld [vmem:[#allocation2 + $0x8] sm:$0xff]  ;;  %v139_v62 = vld [vmem:[#allocation2] sm:$0xff]  ;;  %v202_v9 = vld [vmem:[#allocation2 + $0x1f8] sm:$0xff] }
  0x20   :  { %1110 = vmatprep.subr.mxu0 %v1390_v1  ;;  %983 = vmatprep.subr.mxu1 %v178_v35  ;;  %v31_v63 = vld [vmem:[%s1572_s0] sm:$0x3]  ;;  %v201_v4 = vld [vmem:[#allocation2 + $0x1f0] sm:$0xff]  ;;  %v200_v2 = vld [vmem:[#allocation2 + $0x1e8] sm:$0xff] }
  0x21   :  { %1111 = vmatpush3.msra.mxu0 %v151_v34  ;;  %984 = vmatpush3.msra.mxu1 %v162_v36  ;;  %v199_v10 = vld [vmem:[#allocation2 + $0x1e0] sm:$0xff]  ;;  %v198_v11 = vld [vmem:[#allocation2 + $0x1d8] sm:$0xff]  ;;  %v197_v12 = vld [vmem:[#allocation2 + $0x1d0] sm:$0xff] }
  0x22   :  { %1112 = vmatprep.subr.mxu0 %v1390_v1  ;;  %985 = vmatprep.subr.mxu1 %v177_v38  ;;  %v196_v13 = vld [vmem:[#allocation2 + $0x1c8] sm:$0xff]  ;;  %v195_v14 = vld [vmem:[#allocation2 + $0x1c0] sm:$0xff]  ;;  %v193_v16 = vld [vmem:[#allocation2 + $0x1b0] sm:$0xff] }
  0x23   :  { %1113 = vmatpush3.msra.mxu0 %v150_v37  ;;  %986 = vmatpush3.msra.mxu1 %v161_v39  ;;  %v192_v17 = vld [vmem:[#allocation2 + $0x1a8] sm:$0xff]  ;;  %v191_v18 = vld [vmem:[#allocation2 + $0x1a0] sm:$0xff]  ;;  %v190_v19 = vld [vmem:[#allocation2 + $0x198] sm:$0xff] }
  0x24   :  { %1114 = vmatprep.subr.mxu0 %v1390_v1  ;;  %987 = vmatprep.subr.mxu1 %v176_v41  ;;  %v189_v20 = vld [vmem:[#allocation2 + $0x190] sm:$0xff]  ;;  %v188_v21 = vld [vmem:[#allocation2 + $0x188] sm:$0xff]  ;;  %v187_v22 = vld [vmem:[#allocation2 + $0x180] sm:$0xff] }
  0x25   :  { %1115 = vmatpush3.msra.mxu0 %v149_v40  ;;  %988 = vmatpush3.msra.mxu1 %v160_v42  ;;  %v218_v23 = vld [vmem:[#allocation2 + $0x278] sm:$0xff]  ;;  %v217_v24 = vld [vmem:[#allocation2 + $0x270] sm:$0xff]  ;;  %v216_v25 = vld [vmem:[#allocation2 + $0x268] sm:$0xff] }
  0x26   :  { %1116 = vmatprep.subr.mxu0 %v1390_v1  ;;  %989 = vmatprep.subr.mxu1 %v175_v44  ;;  %v215_v26 = vld [vmem:[#allocation2 + $0x260] sm:$0xff]  ;;  %v214_v27 = vld [vmem:[#allocation2 + $0x258] sm:$0xff]  ;;  %v213_v28 = vld [vmem:[#allocation2 + $0x250] sm:$0xff] }
  0x27   :  { %1117 = vmatpush3.msra.mxu0 %v148_v43  ;;  %990 = vmatpush3.msra.mxu1 %v159_v45  ;;  %v212_v29 = vld [vmem:[#allocation2 + $0x248] sm:$0xff]  ;;  %v211_v30 = vld [vmem:[#allocation2 + $0x240] sm:$0xff]  ;;  %v210_v31 = vld [vmem:[#allocation2 + $0x238] sm:$0xff] }
  0x28   :  { %1118 = vmatprep.subr.mxu0 %v1390_v1  ;;  %991 = vmatprep.subr.mxu1 %v174_v47  ;;  %v209_v32 = vld [vmem:[#allocation2 + $0x230] sm:$0xff]  ;;  %v208_v33 = vld [vmem:[#allocation2 + $0x228] sm:$0xff]  ;;  %v207_v34 = vld [vmem:[#allocation2 + $0x220] sm:$0xff] }
  0x29   :  { %1119 = vmatpush3.msra.mxu0 %v147_v46  ;;  %992 = vmatpush3.msra.mxu1 %v158_v48  ;;  %v206_v35 = vld [vmem:[#allocation2 + $0x218] sm:$0xff]  ;;  %v205_v36 = vld [vmem:[#allocation2 + $0x210] sm:$0xff]  ;;  %v961_v40 = vld [vmem:[#allocation2 + $0x400] ss:$0 sm:$0xff] }
  0x2a   :  { %1120 = vmatprep.subr.mxu0 %v1390_v1  ;;  %993 = vmatprep.subr.mxu1 %v173_v50 }
  0x2b   :  { %1121 = vmatpush3.msra.mxu0 %v146_v49  ;;  %994 = vmatpush3.msra.mxu1 %v157_v54 }
  0x2c   :  { %1122 = vmatprep.subr.mxu0 %v1390_v1  ;;  %995 = vmatprep.subr.mxu1 %v172_v56 }
  0x2d   :  { %1123 = vmatpush3.msra.mxu0 %v145_v51  ;;  %996 = vmatpush3.msra.mxu1 %v156_v57 }
  0x2e   :  { %1124 = vmatprep.subr.mxu0 %v1390_v1  ;;  %997 = vmatprep.subr.mxu1 %v171_v59 }
  0x2f   :  { %1125 = vmatpush3.msra.mxu0 %v144_v52  ;;  %998 = vmatpush3.msra.mxu1 %v155_v60 }
  0x30   :  { %1126 = vmatprep.subr.mxu0 %v1390_v1  ;;  %1139 = vmatprep.subr.mxu1 %v1390_v1 }
  0x31   :  { %1127 = vmatpush3.msra.mxu0 %v143_v53  ;;  %1136 = vmatprep.mubr.msk.f32.mxu0 %vm1392_vm10, %v1390_v1 }
  0x32   :  { %1128 = vmatprep.subr.mxu0 %v1390_v1 }
  0x33   :  { %1129 = vmatpush3.msra.mxu0 %v142_v55 }
  0x34   :  { %1130 = vmatprep.subr.mxu0 %v1390_v1 }
  0x35   :  { %1131 = vmatpush3.msra.mxu0 %v141_v58 }
  0x36   :  { %1132 = vmatprep.subr.mxu0 %v1390_v1 }
  0x37   :  { %1133 = vmatpush3.msra.mxu0 %v140_v61 }
  0x38   :  { %1134 = vmatprep.subr.mxu0 %v1390_v1 }
  0x39   :  { %1135 = vmatpush3.msra.mxu0 %v139_v62 }
  0x3a   :  { %1137 = vmatmul.mubr.f32.vlgmr.msra.gmra.mxu0 %v31_v63  ;;  %1174 = vmatprep.subr.mxu0 %v1390_v1 }
  0x3b   :  { %1206 = vmatprep.mubr.msk.f32.mxu0 %vm1392_vm10, %v1390_v1  ;;  %1175 = vmatpush3.msra.mxu0 %v218_v23  ;;  %v237_v23 = vld [vmem:[#allocation2 + $0x310] sm:$0xff] }
  0x3c   :  { %1176 = vmatprep.subr.mxu0 %v1390_v1 }
  0x3d   :  { %1177 = vmatpush3.msra.mxu0 %v217_v24  ;;  %v236_v24 = vld [vmem:[#allocation2 + $0x308] sm:$0xff] }
  0x3e   :  { %1178 = vmatprep.subr.mxu0 %v1390_v1 }
  0x3f   :  { %1179 = vmatpush3.msra.mxu0 %v216_v25  ;;  %v235_v25 = vld [vmem:[#allocation2 + $0x300] sm:$0xff] }
  0x40   :  { %1180 = vmatprep.subr.mxu0 %v1390_v1 }
  0x41   :  { %1181 = vmatpush3.msra.mxu0 %v215_v26  ;;  %v962_v26 = vld [vmem:[#allocation2 + $0x408] ss:$0 sm:$0xff] }
  0x42   :  { %1182 = vmatprep.subr.mxu0 %v1390_v1 }
  0x43   :  { %1183 = vmatpush3.msra.mxu0 %v214_v27 }
  0x44   :  { %1184 = vmatprep.subr.mxu0 %v1390_v1 }
  0x45   :  { %1185 = vmatpush3.msra.mxu0 %v213_v28 }
  0x46   :  { %1186 = vmatprep.subr.mxu0 %v1390_v1 }
  0x47   :  { %1187 = vmatpush3.msra.mxu0 %v212_v29 }
  0x48   :  { %1188 = vmatprep.subr.mxu0 %v1390_v1 }
  0x49   :  { %1189 = vmatpush3.msra.mxu0 %v211_v30 }
  0x4a   :  { %1190 = vmatprep.subr.mxu0 %v1390_v1 }
  0x4b   :  { %1191 = vmatpush3.msra.mxu0 %v210_v31 }
  0x4c   :  { %1192 = vmatprep.subr.mxu0 %v1390_v1 }
  0x4d   :  { %1193 = vmatpush3.msra.mxu0 %v209_v32 }
  0x4e   :  { %1194 = vmatprep.subr.mxu0 %v1390_v1 }
  0x4f   :  { %1195 = vmatpush3.msra.mxu0 %v208_v33 }
  0x50   :  { %1196 = vmatprep.subr.mxu0 %v1390_v1 }
  0x51   :  { %1197 = vmatpush3.msra.mxu0 %v207_v34 }
  0x52   :  { %1198 = vmatprep.subr.mxu0 %v1390_v1 }
  0x53   :  { %1199 = vmatpush3.msra.mxu0 %v206_v35 }
  0x54   :  { %1200 = vmatprep.subr.mxu0 %v1390_v1 }
  0x55   :  { %1201 = vmatpush3.msra.mxu0 %v205_v36 }
  0x56   :  { %1202 = vmatprep.subr.mxu0 %v1390_v1 }
  0xda   :  { %v128_v3 = vpop.f32.mrf.mxu0 }
  0xdb   :  { %vm135_vm12 = vcmp.eq.f32.partialorder %v133_v5, %v128_v3 }
  0xdc   :  { %v130_v6 = vpop.f32.mrf.mxu0 }
  0xdd   :  { %vm136_vm11 = vcmp.eq.f32.partialorder %v134_v0, %v130_v6 }
  0xde   :  { %959 = vmatprep.mubr.msk.f32.mxu1 %vm136_vm11, %v1391_v15 }
  0xdf   :  { %960 = vmatmul.mubr.msk.f32.vlgmr.msra.gmra.mxu1 %vm135_vm12, %v1391_v15  ;;  %v194_v15 = vld [vmem:[#allocation2 + $0x1b8] sm:$0xff] }
  0xe0   :  { %1171 = vmatprep.mubr.msk.f32.mxu1 %vm1392_vm10, %v1390_v1  ;;  %1140 = vmatpush3.msra.mxu1 %v202_v9 }
  0xe1   :  { %1141 = vmatprep.subr.mxu1 %v1390_v1 }
  0xe2   :  { %1142 = vmatpush3.msra.mxu1 %v201_v4  ;;  %v204_v4 = vld [vmem:[#allocation2 + $0x208] sm:$0xff] }
  0xe3   :  { %1143 = vmatprep.subr.mxu1 %v1390_v1  ;;  %1203 = vmatpush3.msra.mxu0 %v204_v4 }
  0xe4   :  { %1144 = vmatpush3.msra.mxu1 %v200_v2  ;;  %1204 = vmatprep.subr.mxu0 %v1390_v1  ;;  %v203_v2 = vld [vmem:[#allocation2 + $0x200] sm:$0xff] }
  0xe5   :  { %1145 = vmatprep.subr.mxu1 %v1390_v1  ;;  %1205 = vmatpush3.msra.mxu0 %v203_v2 }
  0xe6   :  { %1146 = vmatpush3.msra.mxu1 %v199_v10  ;;  %1244 = vmatprep.subr.mxu0 %v1390_v1  ;;  %v250_v10 = vld [vmem:[#allocation2 + $0x378] sm:$0xff] }
  0xe7   :  { %1147 = vmatprep.subr.mxu1 %v1390_v1 }
  0xe8   :  { %1148 = vmatpush3.msra.mxu1 %v198_v11  ;;  %v249_v11 = vld [vmem:[#allocation2 + $0x370] sm:$0xff] }
  0xe9   :  { %1149 = vmatprep.subr.mxu1 %v1390_v1 }
  0xea   :  { %1150 = vmatpush3.msra.mxu1 %v197_v12  ;;  %v248_v12 = vld [vmem:[#allocation2 + $0x368] sm:$0xff] }
  0xeb   :  { %1151 = vmatprep.subr.mxu1 %v1390_v1 }
  0xec   :  { %1152 = vmatpush3.msra.mxu1 %v196_v13  ;;  %v247_v13 = vld [vmem:[#allocation2 + $0x360] sm:$0xff] }
  0xed   :  { %1153 = vmatprep.subr.mxu1 %v1390_v1 }
  0xee   :  { %1154 = vmatpush3.msra.mxu1 %v195_v14  ;;  %v246_v14 = vld [vmem:[#allocation2 + $0x358] sm:$0xff] }
  0xef   :  { %1155 = vmatprep.subr.mxu1 %v1390_v1 }
  0xf0   :  { %1156 = vmatpush3.msra.mxu1 %v194_v15  ;;  %v245_v15 = vld [vmem:[#allocation2 + $0x350] sm:$0xff] }
  0xf1   :  { %1157 = vmatprep.subr.mxu1 %v1390_v1 }
  0xf2   :  { %1158 = vmatpush3.msra.mxu1 %v193_v16  ;;  %v244_v16 = vld [vmem:[#allocation2 + $0x348] sm:$0xff] }
  0xf3   :  { %1159 = vmatprep.subr.mxu1 %v1390_v1 }
  0xf4   :  { %1160 = vmatpush3.msra.mxu1 %v192_v17  ;;  %v243_v17 = vld [vmem:[#allocation2 + $0x340] sm:$0xff] }
  0xf5   :  { %1161 = vmatprep.subr.mxu1 %v1390_v1 }
  0xf6   :  { %1162 = vmatpush3.msra.mxu1 %v191_v18  ;;  %v242_v18 = vld [vmem:[#allocation2 + $0x338] sm:$0xff] }
  0xf7   :  { %1163 = vmatprep.subr.mxu1 %v1390_v1 }
  0xf8   :  { %1164 = vmatpush3.msra.mxu1 %v190_v19  ;;  %v241_v19 = vld [vmem:[#allocation2 + $0x330] sm:$0xff] }
  0xf9   :  { %1165 = vmatprep.subr.mxu1 %v1390_v1 }
  0xfa   :  { %v1471_v7 = vpop.f32.mrf.mxu0  ;;  %1166 = vmatpush3.msra.mxu1 %v189_v20  ;;  %v240_v20 = vld [vmem:[#allocation2 + $0x328] sm:$0xff] }
  0xfb   :  { %1167 = vmatprep.subr.mxu1 %v1390_v1 }
  0xfc   :  { %v1138_v8 = vpop.f32.mrf.mxu0  ;;  %1168 = vmatpush3.msra.mxu1 %v188_v21  ;;  %v239_v21 = vld [vmem:[#allocation2 + $0x320] sm:$0xff] }
  0xfd   :  { %1169 = vmatprep.subr.mxu1 %v1390_v1 }
  0xfe   :  { %1170 = vmatpush3.msra.mxu1 %v187_v22  ;;  %v238_v22 = vld [vmem:[#allocation2 + $0x318] sm:$0xff] }
  0xff   :  { %1209 = vmatprep.subr.mxu1 %v1390_v1 }
 0x19f   :  { %v999_v37 = vpop.f32.mrf.mxu1 }
 0x1a1   :  { %v1000_v38 = vpop.f32.mrf.mxu1 }
 0x1a2   :  { %v1001_v39 = vadd.f32 %v1000_v38, %v999_v37 }
 0x1a4   :  { %v410_v41 = vadd.f32 %v1001_v39, %v1471_v7 }
 0x1a6   :  { %v417_v42 = vadd.f32 %v961_v40, %v410_v41 }
 0x1a8   :  { %v418_v43 = vmul.f32 0.70710677, %v417_v42  ;;  %v444_v7 = vmul.f32 0.5, %v417_v42 }
 0x1aa   :  { %v419_v44 = vand.u32 2147483647, %v418_v43  ;;  %vm441_vm13 = vcmp.lt.f32.partialorder %v418_v43, 0.0 }
 0x1ac   :  { %v420_v45 = vmul.f32 0.3275911, %v419_v44  ;;  %v435_v47 = vsub.f32 0.0, %v419_v44 }
 0x1ae   :  { %v421_v46 = vadd.f32 1.0, %v420_v45  ;;  %v436_v51 = vmul.f32 %v435_v47, %v419_v44 }
 0x1b0   :  { %1323 = vrcp.f32 %v421_v46  ;;  %v437_v54 = vmul.f32 1.442695, %v436_v51 }
 0x1b2   :  { %1325 = vpow2.f32 %v437_v54 }
 0x1bd   :  { %v1324_v48 = vpop.eup %1323 }
 0x1be   :  { %v423_v49 = vmul.f32 %v1324_v48, %v421_v46 }
 0x1bf   :  { %v1326_v63 = vpop.eup %1325 }
 0x1c0   :  { %v424_v50 = vsub.f32 2.0, %v423_v49 }
 0x1c2   :  { %v425_v52 = vmul.f32 %v1324_v48, %v424_v50 }
 0x1c4   :  { %v426_v53 = vmul.f32 1.0614054, %v425_v52 }
 0x1c6   :  { %v427_v55 = vadd.f32 -1.4531521, %v426_v53 }
 0x1c8   :  { %v428_v56 = vmul.f32 %v427_v55, %v425_v52 }
 0x1ca   :  { %v429_v57 = vadd.f32 1.4214138, %v428_v56 }
 0x1cc   :  { %v430_v58 = vmul.f32 %v429_v57, %v425_v52 }
 0x1ce   :  { %v431_v59 = vadd.f32 -0.28449672, %v430_v58 }
 0x1d0   :  { %v432_v60 = vmul.f32 %v431_v59, %v425_v52 }
 0x1d2   :  { %v433_v61 = vadd.f32 0.2548296, %v432_v60 }
 0x1d4   :  { %v434_v62 = vmul.f32 %v433_v61, %v425_v52 }
 0x1d6   :  { %v439_v0 = vmul.f32 %v1326_v63, %v434_v62 }
 0x1d8   :  { %v440_v3 = vsub.f32 1.0, %v439_v0 }
 0x1da   :  { %v442_v5 = vsub.f32 0.0, %v440_v3 }
 0x1dc   :  { %v443_v6 = vsel %vm441_vm13, %v442_v5, %v440_v3 }
 0x1dd   :  { %v445_v8 = vadd.f32 1.0, %v443_v6 }
 0x1df   :  { %v446_v9 = vmul.f32 %v445_v8, %v444_v7 }
 0x1e1   :  { %1172 = vmatmul.mubr.f32.vlgmr.msra.gmra.mxu1 %v446_v9 }
 0x1e2   :  { %1241 = vmatprep.mubr.msk.f32.mxu1 %vm1392_vm10, %v1390_v1  ;;  %1210 = vmatpush3.msra.mxu1 %v250_v10  ;;  %v234_v10 = vld [vmem:[#allocation2 + $0x2f8] sm:$0xff] }
 0x1e3   :  { %1211 = vmatprep.subr.mxu1 %v1390_v1 }
 0x1e4   :  { %1212 = vmatpush3.msra.mxu1 %v249_v11 }
 0x1e5   :  { %1213 = vmatprep.subr.mxu1 %v1390_v1 }
 0x1e6   :  { %1214 = vmatpush3.msra.mxu1 %v248_v12  ;;  %v233_v12 = vld [vmem:[#allocation2 + $0x2f0] sm:$0xff] }
 0x1e7   :  { %1215 = vmatprep.subr.mxu1 %v1390_v1 }
 0x1e8   :  { %1216 = vmatpush3.msra.mxu1 %v247_v13 }
 0x1e9   :  { %1217 = vmatprep.subr.mxu1 %v1390_v1 }
 0x1ea   :  { %1218 = vmatpush3.msra.mxu1 %v246_v14  ;;  %v232_v14 = vld [vmem:[#allocation2 + $0x2e8] sm:$0xff] }
 0x1eb   :  { %1219 = vmatprep.subr.mxu1 %v1390_v1 }
 0x1ec   :  { %1220 = vmatpush3.msra.mxu1 %v245_v15 }
 0x1ed   :  { %1221 = vmatprep.subr.mxu1 %v1390_v1 }
 0x1ee   :  { %1222 = vmatpush3.msra.mxu1 %v244_v16  ;;  %v231_v16 = vld [vmem:[#allocation2 + $0x2e0] sm:$0xff] }
 0x1ef   :  { %1223 = vmatprep.subr.mxu1 %v1390_v1 }
 0x1f0   :  { %1224 = vmatpush3.msra.mxu1 %v243_v17 }
 0x1f1   :  { %1225 = vmatprep.subr.mxu1 %v1390_v1 }
 0x1f2   :  { %1226 = vmatpush3.msra.mxu1 %v242_v18  ;;  %v230_v18 = vld [vmem:[#allocation2 + $0x2d8] sm:$0xff] }
 0x1f3   :  { %1227 = vmatprep.subr.mxu1 %v1390_v1 }
 0x1f4   :  { %1228 = vmatpush3.msra.mxu1 %v241_v19 }
 0x1f5   :  { %1229 = vmatprep.subr.mxu1 %v1390_v1 }
 0x1f6   :  { %1230 = vmatpush3.msra.mxu1 %v240_v20 }
 0x1f7   :  { %1231 = vmatprep.subr.mxu1 %v1390_v1 }
 0x1f8   :  { %1232 = vmatpush3.msra.mxu1 %v239_v21  ;;  %v229_v21 = vld [vmem:[#allocation2 + $0x2d0] sm:$0xff] }
 0x1f9   :  { %1233 = vmatprep.subr.mxu1 %v1390_v1 }
 0x1fa   :  { %1234 = vmatpush3.msra.mxu1 %v238_v22 }
 0x1fb   :  { %1235 = vmatprep.subr.mxu1 %v1390_v1 }
 0x1fc   :  { %1236 = vmatpush3.msra.mxu1 %v237_v23  ;;  %v228_v23 = vld [vmem:[#allocation2 + $0x2c8] sm:$0xff] }
 0x1fd   :  { %1237 = vmatprep.subr.mxu1 %v1390_v1 }
 0x1fe   :  { %1238 = vmatpush3.msra.mxu1 %v236_v24 }
 0x1ff   :  { %1239 = vmatprep.subr.mxu1 %v1390_v1 }
 0x200   :  { %1240 = vmatpush3.msra.mxu1 %v235_v25  ;;  %v227_v25 = vld [vmem:[#allocation2 + $0x2c0] sm:$0xff] }
 0x201   :  { %1279 = vmatprep.subr.mxu1 %v1390_v1 }
 0x2a1   :  { %v517_v27 = vpop.f32.mrf.mxu1 }
 0x2a2   :  { %v518_v28 = vadd.f32 %v962_v26, %v517_v27  ;;  %v226_v27 = vld [vmem:[#allocation2 + $0x2b8] sm:$0xff] }
 0x2a3   :  { %v1173_v29 = vpop.f32.mrf.mxu1 }
 0x2a4   :  { %v521_v30 = vmul.f32 0.70710677, %v518_v28  ;;  %1207 = vmatmul.mubr.f32.vlgmr.msra.gmra.mxu0 %v518_v28  ;;  %v547_v55 = vmul.f32 0.5, %v518_v28 }
 0x2a5   :  { %1276 = vmatprep.mubr.msk.f32.mxu0 %vm1392_vm10, %v1390_v1  ;;  %1245 = vmatpush3.msra.mxu0 %v234_v10 }
 0x2a6   :  { %v522_v31 = vand.u32 2147483647, %v521_v30  ;;  %vm544_vm14 = vcmp.lt.f32.partialorder %v521_v30, 0.0  ;;  %1246 = vmatprep.subr.mxu0 %v1390_v1 }
 0x2a7   :  { %1247 = vmatpush3.msra.mxu0 %v233_v12 }
 0x2a8   :  { %v523_v32 = vmul.f32 0.3275911, %v522_v31  ;;  %v538_v34 = vsub.f32 0.0, %v522_v31  ;;  %1248 = vmatprep.subr.mxu0 %v1390_v1 }
 0x2a9   :  { %1249 = vmatpush3.msra.mxu0 %v232_v14 }
 0x2aa   :  { %v524_v33 = vadd.f32 1.0, %v523_v32  ;;  %v539_v38 = vmul.f32 %v538_v34, %v522_v31  ;;  %1250 = vmatprep.subr.mxu0 %v1390_v1  ;;  %v225_v31 = vld [vmem:[#allocation2 + $0x2b0] sm:$0xff]  ;;  %v223_v34 = vld [vmem:[#allocation2 + $0x2a0] sm:$0xff] }
 0x2ab   :  { %1251 = vmatpush3.msra.mxu0 %v231_v16 }
 0x2ac   :  { %1327 = vrcp.f32 %v524_v33  ;;  %v540_v41 = vmul.f32 1.442695, %v539_v38  ;;  %1252 = vmatprep.subr.mxu0 %v1390_v1  ;;  %v219_v38 = vld [vmem:[#allocation2 + $0x280] sm:$0xff] }
 0x2ad   :  { %1253 = vmatpush3.msra.mxu0 %v230_v18 }
 0x2ae   :  { %1329 = vpow2.f32 %v540_v41  ;;  %1254 = vmatprep.subr.mxu0 %v1390_v1 }
 0x2af   :  { %1255 = vmatpush3.msra.mxu0 %v229_v21 }
 0x2b0   :  { %1256 = vmatprep.subr.mxu0 %v1390_v1 }
 0x2b1   :  { %1257 = vmatpush3.msra.mxu0 %v228_v23 }
 0x2b2   :  { %1258 = vmatprep.subr.mxu0 %v1390_v1 }
 0x2b3   :  { %1259 = vmatpush3.msra.mxu0 %v227_v25 }
 0x2b4   :  { %1260 = vmatprep.subr.mxu0 %v1390_v1 }
 0x2b5   :  { %1261 = vmatpush3.msra.mxu0 %v226_v27 }
 0x2b6   :  { %1262 = vmatprep.subr.mxu0 %v1390_v1 }
 0x2b7   :  { %1263 = vmatpush3.msra.mxu0 %v225_v31 }
 0x2b8   :  { %1264 = vmatprep.subr.mxu0 %v1390_v1 }
 0x2b9   :  { %v1328_v35 = vpop.eup %1327 }
 0x2ba   :  { %v526_v36 = vmul.f32 %v1328_v35, %v524_v33  ;;  %v224_v33 = vld [vmem:[#allocation2 + $0x2a8] sm:$0xff] }
 0x2bb   :  { %v1330_v50 = vpop.eup %1329  ;;  %1265 = vmatpush3.msra.mxu0 %v224_v33 }
 0x2bc   :  { %v527_v37 = vsub.f32 2.0, %v526_v36  ;;  %1266 = vmatprep.subr.mxu0 %v1390_v1  ;;  %v221_v36 = vld [vmem:[#allocation2 + $0x290] sm:$0xff] }
 0x2bd   :  { %1267 = vmatpush3.msra.mxu0 %v223_v34 }
 0x2be   :  { %v528_v39 = vmul.f32 %v1328_v35, %v527_v37  ;;  %1268 = vmatprep.subr.mxu0 %v1390_v1  ;;  %v222_v35 = vld [vmem:[#allocation2 + $0x298] sm:$0xff]  ;;  %v220_v37 = vld [vmem:[#allocation2 + $0x288] sm:$0xff] }
 0x2bf   :  { %1269 = vmatpush3.msra.mxu0 %v222_v35 }
 0x2c0   :  { %v529_v40 = vmul.f32 1.0614054, %v528_v39  ;;  %1270 = vmatprep.subr.mxu0 %v1390_v1 }
 0x2c1   :  { %1271 = vmatpush3.msra.mxu0 %v221_v36 }
 0x2c2   :  { %v530_v42 = vadd.f32 -1.4531521, %v529_v40  ;;  %1272 = vmatprep.subr.mxu0 %v1390_v1 }
 0x2c3   :  { %1273 = vmatpush3.msra.mxu0 %v220_v37 }
 0x2c4   :  { %v531_v43 = vmul.f32 %v530_v42, %v528_v39  ;;  %1274 = vmatprep.subr.mxu0 %v1390_v1 }
 0x2c5   :  { %1275 = vmatpush3.msra.mxu0 %v219_v38 }
 0x2c6   :  { %v532_v44 = vadd.f32 1.4214138, %v531_v43 }
 0x2c8   :  { %v533_v45 = vmul.f32 %v532_v44, %v528_v39 }
 0x2ca   :  { %v534_v46 = vadd.f32 -0.28449672, %v533_v45 }
 0x2cc   :  { %v535_v47 = vmul.f32 %v534_v46, %v528_v39 }
 0x2ce   :  { %v536_v48 = vadd.f32 0.2548296, %v535_v47  ;;  %v266_v47 = vld [vmem:[#allocation2 + $0x3f8] sm:$0xff] }
 0x2d0   :  { %v537_v49 = vmul.f32 %v536_v48, %v528_v39  ;;  %v963_v39 = vld [vmem:[#allocation2 + $0x410] ss:$0 sm:$0xff] }
 0x2d1   :  { %v265_v48 = vld [vmem:[#allocation2 + $0x3f0] sm:$0xff] }
 0x2d2   :  { %v542_v51 = vmul.f32 %v1330_v50, %v537_v49  ;;  %v264_v49 = vld [vmem:[#allocation2 + $0x3e8] sm:$0xff]  ;;  %v263_v50 = vld [vmem:[#allocation2 + $0x3e0] sm:$0xff] }
 0x2d4   :  { %v543_v52 = vsub.f32 1.0, %v542_v51  ;;  %v262_v51 = vld [vmem:[#allocation2 + $0x3d8] sm:$0xff] }
 0x2d6   :  { %v545_v53 = vsub.f32 0.0, %v543_v52 }
 0x2d8   :  { %v546_v54 = vsel %vm544_vm14, %v545_v53, %v543_v52 }
 0x2d9   :  { %v548_v56 = vadd.f32 1.0, %v546_v54  ;;  %v261_v54 = vld [vmem:[#allocation2 + $0x3d0] sm:$0xff] }
 0x2db   :  { %v549_v57 = vmul.f32 %v548_v56, %v547_v55  ;;  %v260_v56 = vld [vmem:[#allocation2 + $0x3c8] sm:$0xff] }
 0x2dd   :  { %v550_v58 = vmul.f32 0.70710677, %v549_v57  ;;  %v576_v29 = vmul.f32 0.5, %v549_v57 }
 0x2df   :  { %v551_v59 = vand.u32 2147483647, %v550_v58  ;;  %vm573_vm15 = vcmp.lt.f32.partialorder %v550_v58, 0.0 }
 0x2e1   :  { %v552_v60 = vmul.f32 0.3275911, %v551_v59  ;;  %v567_v62 = vsub.f32 0.0, %v551_v59 }
 0x2e3   :  { %v553_v61 = vadd.f32 1.0, %v552_v60  ;;  %v568_v5 = vmul.f32 %v567_v62, %v551_v59  ;;  %v259_v59 = vld [vmem:[#allocation2 + $0x3c0] sm:$0xff] }
 0x2e5   :  { %1331 = vrcp.f32 %v553_v61  ;;  %v569_v7 = vmul.f32 1.442695, %v568_v5  ;;  %v256_v5 = vld [vmem:[#allocation2 + $0x3a8] sm:$0xff] }
 0x2e7   :  { %1333 = vpow2.f32 %v569_v7  ;;  %v255_v7 = vld [vmem:[#allocation2 + $0x3a0] sm:$0xff] }
 0x2f2   :  { %v1332_v63 = vpop.eup %1331 }
 0x2f3   :  { %v555_v0 = vmul.f32 %v1332_v63, %v553_v61  ;;  %v258_v61 = vld [vmem:[#allocation2 + $0x3b8] sm:$0xff] }
 0x2f4   :  { %v1334_v20 = vpop.eup %1333 }
 0x2f5   :  { %v556_v3 = vsub.f32 2.0, %v555_v0  ;;  %v257_v0 = vld [vmem:[#allocation2 + $0x3b0] sm:$0xff] }
 0x2f7   :  { %v557_v6 = vmul.f32 %v1332_v63, %v556_v3 }
 0x2f9   :  { %v558_v8 = vmul.f32 1.0614054, %v557_v6 }
 0x2fb   :  { %v559_v9 = vadd.f32 -1.4531521, %v558_v8 }
 0x2fd   :  { %v560_v4 = vmul.f32 %v559_v9, %v557_v6  ;;  %v254_v9 = vld [vmem:[#allocation2 + $0x398] sm:$0xff] }
 0x2ff   :  { %v561_v2 = vadd.f32 1.4214138, %v560_v4 }
 0x301   :  { %v562_v11 = vmul.f32 %v561_v2, %v557_v6  ;;  %v253_v2 = vld [vmem:[#allocation2 + $0x390] sm:$0xff] }
 0x303   :  { %v563_v13 = vadd.f32 -0.28449672, %v562_v11  ;;  %v252_v11 = vld [vmem:[#allocation2 + $0x388] sm:$0xff] }
 0x305   :  { %v564_v15 = vmul.f32 %v563_v13, %v557_v6  ;;  %v251_v13 = vld [vmem:[#allocation2 + $0x380] sm:$0xff] }
 0x307   :  { %v565_v17 = vadd.f32 0.2548296, %v564_v15 }
 0x309   :  { %v566_v19 = vmul.f32 %v565_v17, %v557_v6 }
 0x30b   :  { %v571_v22 = vmul.f32 %v1334_v20, %v566_v19 }
 0x30d   :  { %v572_v24 = vsub.f32 1.0, %v571_v22 }
 0x30f   :  { %v574_v26 = vsub.f32 0.0, %v572_v24 }
 0x311   :  { %v575_v28 = vsel %vm573_vm15, %v574_v26, %v572_v24  ;;  %v964_v24 = vld [vmem:[#allocation2 + $0x420] ss:$0 sm:$0xff] }
 0x312   :  { %v577_v30 = vadd.f32 1.0, %v575_v28 }
 0x314   :  { %v578_v32 = vmul.f32 %v577_v30, %v576_v29 }
 0x316   :  { %1242 = vmatmul.mubr.f32.vlgmr.msra.gmra.mxu1 %v578_v32 }
 0x317   :  { %1311 = vmatprep.mubr.msk.f32.mxu1 %vm1392_vm10, %v1390_v1  ;;  %1280 = vmatpush3.msra.mxu1 %v266_v47 }
 0x318   :  { %1281 = vmatprep.subr.mxu1 %v1390_v1 }
 0x319   :  { %1282 = vmatpush3.msra.mxu1 %v265_v48 }
 0x31a   :  { %1283 = vmatprep.subr.mxu1 %v1390_v1 }
 0x31b   :  { %1284 = vmatpush3.msra.mxu1 %v264_v49 }
 0x31c   :  { %1285 = vmatprep.subr.mxu1 %v1390_v1 }
 0x31d   :  { %1286 = vmatpush3.msra.mxu1 %v263_v50 }
 0x31e   :  { %1287 = vmatprep.subr.mxu1 %v1390_v1 }
 0x31f   :  { %1288 = vmatpush3.msra.mxu1 %v262_v51 }
 0x320   :  { %1289 = vmatprep.subr.mxu1 %v1390_v1 }
 0x321   :  { %1290 = vmatpush3.msra.mxu1 %v261_v54 }
 0x322   :  { %1291 = vmatprep.subr.mxu1 %v1390_v1 }
 0x323   :  { %1292 = vmatpush3.msra.mxu1 %v260_v56 }
 0x324   :  { %1293 = vmatprep.subr.mxu1 %v1390_v1 }
 0x325   :  { %1294 = vmatpush3.msra.mxu1 %v259_v59  ;;  %v966_v59 = vld [vmem:[#allocation2 + $0x428] ss:$0 sm:$0xff] }
 0x326   :  { %1295 = vmatprep.subr.mxu1 %v1390_v1 }
 0x327   :  { %1296 = vmatpush3.msra.mxu1 %v258_v61 }
 0x328   :  { %1297 = vmatprep.subr.mxu1 %v1390_v1 }
 0x329   :  { %1298 = vmatpush3.msra.mxu1 %v257_v0 }
 0x32a   :  { %1299 = vmatprep.subr.mxu1 %v1390_v1 }
 0x32b   :  { %1300 = vmatpush3.msra.mxu1 %v256_v5 }
 0x32c   :  { %1301 = vmatprep.subr.mxu1 %v1390_v1 }
 0x32d   :  { %1302 = vmatpush3.msra.mxu1 %v255_v7 }
 0x32e   :  { %1303 = vmatprep.subr.mxu1 %v1390_v1 }
 0x32f   :  { %1304 = vmatpush3.msra.mxu1 %v254_v9 }
 0x330   :  { %1305 = vmatprep.subr.mxu1 %v1390_v1 }
 0x331   :  { %1306 = vmatpush3.msra.mxu1 %v253_v2 }
 0x332   :  { %1307 = vmatprep.subr.mxu1 %v1390_v1 }
 0x333   :  { %1308 = vmatpush3.msra.mxu1 %v252_v11 }
 0x334   :  { %1309 = vmatprep.subr.mxu1 %v1390_v1 }
 0x335   :  { %1310 = vmatpush3.msra.mxu1 %v251_v13 }
 0x364   :  { %v649_v40 = vpop.f32.mrf.mxu0 }
 0x365   :  { %v1543_v41 = vadd.f32 %v963_v39, %v649_v40 }
 0x366   :  { %v1208_v42 = vpop.f32.mrf.mxu0 }
 0x367   :  { %v1546_v43 = vmul.f32 0.70710677, %v1543_v41  ;;  %v753_v21 = vmul.f32 0.5, %v1543_v41 }
 0x369   :  { %v728_v44 = vand.u32 2147483647, %v1546_v43  ;;  %vm750_vm0 = vcmp.lt.f32.partialorder %v1546_v43, 0.0 }
 0x36b   :  { %v729_v45 = vmul.f32 0.3275911, %v728_v44  ;;  %v744_v52 = vsub.f32 0.0, %v728_v44 }
 0x36d   :  { %v730_v46 = vadd.f32 1.0, %v729_v45  ;;  %v745_v58 = vmul.f32 %v744_v52, %v728_v44 }
 0x36f   :  { %1335 = vrcp.f32 %v730_v46  ;;  %v746_v63 = vmul.f32 1.442695, %v745_v58 }
 0x371   :  { %1337 = vpow2.f32 %v746_v63 }
 0x37c   :  { %v1336_v53 = vpop.eup %1335 }
 0x37d   :  { %v732_v55 = vmul.f32 %v1336_v53, %v730_v46 }
 0x37e   :  { %v1338_v16 = vpop.eup %1337 }
 0x37f   :  { %v733_v57 = vsub.f32 2.0, %v732_v55  ;;  %v965_v55 = vld [vmem:[#allocation2 + $0x418] ss:$0 sm:$0xff] }
 0x381   :  { %v734_v60 = vmul.f32 %v1336_v53, %v733_v57 }
 0x383   :  { %v735_v62 = vmul.f32 1.0614054, %v734_v60 }
 0x385   :  { %v736_v3 = vadd.f32 -1.4531521, %v735_v62 }
 0x387   :  { %v737_v6 = vmul.f32 %v736_v3, %v734_v60 }
 0x389   :  { %v738_v8 = vadd.f32 1.4214138, %v737_v6 }
 0x38b   :  { %v739_v4 = vmul.f32 %v738_v8, %v734_v60 }
 0x38d   :  { %v740_v10 = vadd.f32 -0.28449672, %v739_v4 }
 0x38f   :  { %v741_v12 = vmul.f32 %v740_v10, %v734_v60 }
 0x391   :  { %v742_v14 = vadd.f32 0.2548296, %v741_v12 }
 0x393   :  { %v743_v15 = vmul.f32 %v742_v14, %v734_v60 }
 0x395   :  { %v748_v17 = vmul.f32 %v1338_v16, %v743_v15 }
 0x397   :  { %v749_v18 = vsub.f32 1.0, %v748_v17 }
 0x399   :  { %v751_v19 = vsub.f32 0.0, %v749_v18 }
 0x39b   :  { %v752_v20 = vsel %vm750_vm0, %v751_v19, %v749_v18 }
 0x39c   :  { %v754_v22 = vadd.f32 1.0, %v752_v20 }
 0x39e   :  { %v755_v23 = vmul.f32 %v754_v22, %v753_v21 }
 0x3a0   :  { %1277 = vmatmul.mubr.f32.vlgmr.msra.gmra.mxu0 %v755_v23 }
 0x3d6   :  { %v723_v25 = vpop.f32.mrf.mxu1 }
 0x3d7   :  { %v724_v26 = vadd.f32 %v964_v24, %v723_v25 }
 0x3d8   :  { %v1243_v1 = vpop.f32.mrf.mxu1 }
 0x3d9   :  { %v756_v27 = vmul.f32 0.70710677, %v724_v26  ;;  %v782_v52 = vmul.f32 0.5, %v724_v26 }
 0x3db   :  { %v757_v28 = vand.u32 2147483647, %v756_v27  ;;  %vm779_vm1 = vcmp.lt.f32.partialorder %v756_v27, 0.0 }
 0x3dd   :  { %v758_v29 = vmul.f32 0.3275911, %v757_v28  ;;  %v773_v31 = vsub.f32 0.0, %v757_v28 }
 0x3df   :  { %v759_v30 = vadd.f32 1.0, %v758_v29  ;;  %v774_v35 = vmul.f32 %v773_v31, %v757_v28 }
 0x3e1   :  { %1339 = vrcp.f32 %v759_v30  ;;  %v775_v38 = vmul.f32 1.442695, %v774_v35 }
 0x3e3   :  { %1341 = vpow2.f32 %v775_v38 }
 0x3ee   :  { %v1340_v32 = vpop.eup %1339 }
 0x3ef   :  { %v761_v33 = vmul.f32 %v1340_v32, %v759_v30 }
 0x3f0   :  { %v1342_v47 = vpop.eup %1341 }
 0x3f1   :  { %v762_v34 = vsub.f32 2.0, %v761_v33 }
 0x3f3   :  { %v763_v36 = vmul.f32 %v1340_v32, %v762_v34 }
 0x3f5   :  { %v764_v37 = vmul.f32 1.0614054, %v763_v36 }
 0x3f7   :  { %v765_v39 = vadd.f32 -1.4531521, %v764_v37 }
 0x3f9   :  { %v766_v40 = vmul.f32 %v765_v39, %v763_v36 }
 0x3fb   :  { %v767_v41 = vadd.f32 1.4214138, %v766_v40 }
 0x3fd   :  { %v768_v42 = vmul.f32 %v767_v41, %v763_v36 }
 0x3ff   :  { %v769_v43 = vadd.f32 -0.28449672, %v768_v42 }
 0x401   :  { %v770_v44 = vmul.f32 %v769_v43, %v763_v36 }
 0x403   :  { %v771_v45 = vadd.f32 0.2548296, %v770_v44 }
 0x405   :  { %v772_v46 = vmul.f32 %v771_v45, %v763_v36 }
 0x407   :  { %v777_v48 = vmul.f32 %v1342_v47, %v772_v46 }
 0x409   :  { %v778_v49 = vsub.f32 1.0, %v777_v48 }
 0x40b   :  { %v780_v50 = vsub.f32 0.0, %v778_v49 }
 0x40d   :  { %v781_v51 = vsel %vm779_vm1, %v780_v50, %v778_v49 }
 0x40e   :  { %v783_v53 = vadd.f32 1.0, %v781_v51 }
 0x410   :  { %v784_v54 = vmul.f32 %v783_v53, %v782_v52 }
 0x412   :  { %1312 = vmatmul.mubr.f32.vlgmr.msra.gmra.mxu1 %v784_v54 }
 0x460   :  { %v855_v56 = vpop.f32.mrf.mxu0 }
 0x461   :  { %v856_v57 = vadd.f32 %v965_v55, %v855_v56 }
 0x462   :  { %v1278_v58 = vpop.f32.mrf.mxu0 }
 0x463   :  { %859 = vst [vmem:[%s1576_s4] sm:$0x3] %v856_v57 }
 0x4d2   :  { %v930_v60 = vpop.f32.mrf.mxu1 }
 0x4d3   :  { %v931_v61 = vadd.f32 %v966_v59, %v930_v60 }
 0x4d4   :  { %v1313_v62 = vpop.f32.mrf.mxu1 }
 0x4d5   :  { %934 = vst [vmem:[#allocation5] sm:$0x3] %v931_v61 }
 0x4d6   :  { %1374 = shalt.err (!%p1371_p9)
}
 0x4d7   :  { %944 = dma.vmem_to_hbm [thread:$0]  %s942_s26, 32, %s1575_s3, [#allocation4]  }
 0x4d8   :  { %1385 = dma.done.wait [#allocation4], 32  }
 0x4d9   :  { %1386 = vsyncadd [#allocation4], 4294967264 }
 0x4da   :  { %952 = vsyncpa [#allocation3], 1 }
 0x4db   :  { %953 = vsyncpa [#allocation4], 1 }

</bundles_post_ra>
